<compile_context>
chip_gen: v6e
topology: v6e:2x2x1
jax: 0.10.0
libtpu: 0.0.40
codegen_flags: <defaults>
</compile_context>

<pallas_src>
import functools

import jax
import jax.numpy as jnp
from jax import lax
from jax.experimental import pallas as pl
from jax.experimental.pallas import tpu as pltpu


# ----------------------------------------------------------------------------
# Pallas kernels
# ----------------------------------------------------------------------------
def _bilstm_chunk_body(x_ref, wih_ref, whh_ref, b_ref, h_sc, c_sc, gx_sc, emit,
                       *, hidden, chunk_t):
    """One (direction, time-chunk) grid step of a bidirectional LSTM layer.

    x_ref:   [chunk_t*B, D_in]  current chunk, rows ordered (t_local, batch)
    wih_ref: [D_in, 4H] bf16    pre-transposed input weights (this direction)
    whh_ref: [H, 4H]    bf16    pre-transposed recurrent weights
    b_ref:   [1, 4H]    f32     b_ih + b_hh
    h_sc/c_sc: [B, H]   f32     recurrent state carried across chunks
    gx_sc:   [chunk_t*B, 4H] f32 scratch holding the hoisted input projection
    emit(row, h_new):           per-timestep output hook
    """
    H = hidden
    bsz = h_sc.shape[0]
    d = pl.program_id(0)                       # 0 = forward, 1 = reverse

    @pl.when(pl.program_id(1) == 0)            # first chunk of this direction
    def _init_state():
        h_sc[...] = jnp.zeros_like(h_sc)
        c_sc[...] = jnp.zeros_like(c_sc)

    # Input projection for the whole chunk: one MXU-friendly matmul (hoisted out
    # of the sequential recurrence).  bf16 operands, f32 accumulation.
    gx_sc[...] = (jnp.dot(x_ref[...].astype(jnp.bfloat16), wih_ref[...],
                          preferred_element_type=jnp.float32) + b_ref[...])
    whh = whh_ref[...]                         # hoisted: loaded once per chunk

    @pl.loop(0, chunk_t)
    def _step(i):
        t = i + d * (chunk_t - 1 - 2 * i)      # fwd: i, rev: chunk_t - 1 - i
        row = pl.multiple_of(t * bsz, 8)       # batch padded to full sublanes
        gates = gx_sc[pl.ds(row, bsz), :] + jnp.dot(
            h_sc[...].astype(jnp.bfloat16), whh,
            preferred_element_type=jnp.float32)                    # [B, 4H]
        i_g = jax.nn.sigmoid(gates[:, 0 * H:1 * H])
        f_g = jax.nn.sigmoid(gates[:, 1 * H:2 * H])
        g_g = jnp.tanh(gates[:, 2 * H:3 * H])
        o_g = jax.nn.sigmoid(gates[:, 3 * H:4 * H])
        c_new = f_g * c_sc[...] + i_g * g_g
        h_new = o_g * jnp.tanh(c_new)
        c_sc[...] = c_new
        h_sc[...] = h_new
        emit(row, h_new)


def _bilstm_seq_kernel(x_ref, wih_ref, whh_ref, b_ref, out_ref,
                       h_sc, c_sc, gx_sc, *, hidden, chunk_t):
    """Intermediate layer: writes the full hidden sequence (its direction's half)."""
    bsz = h_sc.shape[0]

    def emit(row, h_new):
        out_ref[pl.ds(row, bsz), :] = h_new

    _bilstm_chunk_body(x_ref, wih_ref, whh_ref, b_ref, h_sc, c_sc, gx_sc, emit,
                       hidden=hidden, chunk_t=chunk_t)


def _bilstm_pool_kernel(x_ref, mask_ref, wih_ref, whh_ref, b_ref, pool_ref,
                        h_sc, c_sc, gx_sc, *, hidden, chunk_t):
    """Last layer: fuses the masked-sum pooling; only emits [B, H] per direction."""
    bsz = h_sc.shape[0]

    @pl.when(pl.program_id(1) == 0)
    def _init_pool():
        pool_ref[...] = jnp.zeros_like(pool_ref)

    def emit(row, h_new):
        pool_ref[...] += mask_ref[pl.ds(row, bsz), :] * h_new

    _bilstm_chunk_body(x_ref, wih_ref, whh_ref, b_ref, h_sc, c_sc, gx_sc, emit,
                       hidden=hidden, chunk_t=chunk_t)


def _head_kernel(psum_ref, mask_ref, wfc_ref, bfc_ref, gamma_ref, beta_ref,
                 mean_ref, var_ref, out_ref, *, apply_bn, eps_bn):
    """masked mean -> Linear -> (Dropout=id) -> BatchNorm(eval) -> L2 normalize.

    psum_ref: [B, 2H]  masked SUM over time (pooling already fused into the LSTM)
    mask_ref: [B, T]   original masks (to compute the mask sum)
    wfc_ref:  [2H, E]  bf16 (y = x @ W^T + b, pre-transposed)
    out_ref:  [B, E]
    """
    msum = jnp.sum(mask_ref[...], axis=1, keepdims=True)           # [B, 1]
    pooled = psum_ref[...] / msum                                   # masked mean
    emb = jnp.dot(pooled.astype(jnp.bfloat16), wfc_ref[...],
                  preferred_element_type=jnp.float32) + bfc_ref[...]
    # Dropout is identity in eval mode.
    if apply_bn:                       # resolved at trace time: real batch > 1
        inv_std = lax.rsqrt(var_ref[...] + eps_bn)
        emb = (emb - mean_ref[...]) * inv_std * gamma_ref[...] + beta_ref[...]
    nrm = jnp.sqrt(jnp.sum(emb * emb, axis=-1, keepdims=True))
    out_ref[...] = emb / jnp.maximum(nrm, 1e-12)                    # F.normalize


# ----------------------------------------------------------------------------
# Wrappers
# ----------------------------------------------------------------------------
_VMEM_SPEC = pl.BlockSpec(memory_space=pltpu.MemorySpace.VMEM)


def _vmem_limit(block_bytes, scratch_bytes):
    est = 2 * int(block_bytes) + int(scratch_bytes) + (2 << 20)  # x2: double buffer
    return int(min(max(est, 16 << 20), 64 << 20))


def _bilstm_layer(x_km, layer_p, hidden, chunk_t, nk, pool_mask=None):
    """One bidirectional LSTM layer.  x_km: [nk, chunk_t*Bp, D_in].

    pool_mask=None   -> returns full sequence output [nk, chunk_t*Bp, 2H]
    pool_mask given  -> (last layer) returns masked-sum pooled output [Bp, 2H]
    """
    K, CB, Din = x_km.shape
    H = hidden
    G = 4 * H
    Bp = CB // chunk_t

    def ci(d, k):                       # chunk index: fwd scans up, bwd scans down
        return k + d * (nk - 1 - 2 * k)

    x_spec = pl.BlockSpec((None, CB, Din), lambda d, k: (ci(d, k), 0, 0))
    weight_specs = [
        pl.BlockSpec((None, Din, G), lambda d, k: (d, 0, 0)),   # W_ih^T (bf16)
        pl.BlockSpec((None, H, G), lambda d, k: (d, 0, 0)),     # W_hh^T (bf16)
        pl.BlockSpec((None, 1, G), lambda d, k: (d, 0, 0)),     # bias
    ]
    scratch = [
        pltpu.VMEM((Bp, H), jnp.float32),          # h state
        pltpu.VMEM((Bp, H), jnp.float32),          # c state
        pltpu.VMEM((CB, G), jnp.float32),          # chunk input projection
    ]
    block_bytes = CB * Din * 4 + Din * G * 2 + H * G * 2 + G * 4
    scratch_bytes = 2 * Bp * H * 4 + CB * G * 4

    if pool_mask is None:
        kernel = functools.partial(_bilstm_seq_kernel, hidden=H, chunk_t=chunk_t)
        in_specs = [x_spec] + weight_specs
        out_specs = pl.BlockSpec((None, CB, H), lambda d, k: (ci(d, k), 0, d))
        out_shape = jax.ShapeDtypeStruct((K, CB, 2 * H), jnp.float32)
        operands = (x_km, layer_p["w_ih_t"], layer_p["w_hh_t"], layer_p["bias"])
        block_bytes += CB * H * 4
    else:
        kernel = functools.partial(_bilstm_pool_kernel, hidden=H, chunk_t=chunk_t)
        in_specs = ([x_spec,
                     pl.BlockSpec((None, CB, 1), lambda d, k: (ci(d, k), 0, 0))]
                    + weight_specs)
        out_specs = pl.BlockSpec((Bp, H), lambda d, k: (0, d))
        out_shape = jax.ShapeDtypeStruct((Bp, 2 * H), jnp.float32)
        operands = (x_km, pool_mask, layer_p["w_ih_t"], layer_p["w_hh_t"],
                    layer_p["bias"])
        block_bytes += CB * 4 + Bp * H * 4

    grid_spec = pltpu.PrefetchScalarGridSpec(
        num_scalar_prefetch=0,
        grid=(2, nk),                             # (direction, time-chunk)
        in_specs=in_specs,
        out_specs=out_specs,
        scratch_shapes=scratch,
    )
    return pl.pallas_call(
        kernel,
        out_shape=out_shape,
        grid_spec=grid_spec,
        compiler_params=pltpu.CompilerParams(
            dimension_semantics=("parallel", "arbitrary"),
            vmem_limit_bytes=_vmem_limit(block_bytes, scratch_bytes)),
    )(*operands)


def _head(psum, masks, params, apply_bn):
    Bp = psum.shape[0]
    E = params["w_fc_t"].shape[1]
    arrays = (psum, masks, params["w_fc_t"], params["b_fc"],
              params["bn_gamma"], params["bn_beta"],
              params["bn_mean"], params["bn_var"])
    total = sum(int(a.size) * a.dtype.itemsize for a in arrays) + Bp * E * 4
    kernel = functools.partial(_head_kernel, apply_bn=apply_bn, eps_bn=1e-5)
    return pl.pallas_call(
        kernel,
        out_shape=jax.ShapeDtypeStruct((Bp, E), jnp.float32),
        in_specs=[_VMEM_SPEC] * len(arrays),
        out_specs=_VMEM_SPEC,
        compiler_params=pltpu.CompilerParams(
            vmem_limit_bytes=_vmem_limit(total, 0)),
    )(*arrays)


def neural_encoder_forward(x, masks, params, hidden, num_layers, *, time_chunk=64):
    """x: [B, T, input_dim] (batch-first, like PyTorch), masks: [B, T] -> [B, E]."""
    B, T, Din = x.shape
    Bp = max(8, ((B + 7) // 8) * 8)              # pad batch to full sublanes
    chunk_t = min(time_chunk, T)
    while T % chunk_t:                            # largest divisor of T <= time_chunk
        chunk_t -= 1
    nk = T // chunk_t

    xf = x.astype(jnp.float32)
    mf = masks.astype(jnp.float32)
    if Bp != B:
        xf = jnp.pad(xf, ((0, Bp - B), (0, 0), (0, 0)))
        mf = jnp.pad(mf, ((0, Bp - B), (0, 0)))

    # Time-major, chunk-flattened layout: [nk, chunk_t * Bp, D] (free reshape).
    x_km = jnp.transpose(xf, (1, 0, 2)).reshape(nk, chunk_t * Bp, Din)
    m_km = jnp.transpose(mf, (1, 0)).reshape(nk, chunk_t * Bp, 1)

    layer_in = x_km
    psum = None
    for l in range(num_layers):
        last = (l == num_layers - 1)
        if not last:
            layer_in = _bilstm_layer(layer_in, params["lstm"][l], hidden,
                                     chunk_t, nk)
        else:
            psum = _bilstm_layer(layer_in, params["lstm"][l], hidden,
                                 chunk_t, nk, pool_mask=m_km)

    emb = _head(psum, mf, params, apply_bn=(B > 1))
    return emb[:B]


# ----------------------------------------------------------------------------
# Deterministic parameter init (PyTorch-style ranges), weights pre-transposed + bf16
# ----------------------------------------------------------------------------
def init_params(key, input_dim, hidden, num_layers, embedding_dim):
    params = {"lstm": []}
    keys = iter(jax.random.split(key, 8 * num_layers + 2))
    bound = 1.0 / float(hidden) ** 0.5
    in_dim = input_dim
    for _ in range(num_layers):
        wih_l, whh_l, b_l = [], [], []
        for _d in range(2):                                  # fwd, bwd
            w_ih = jax.random.uniform(next(keys), (4 * hidden, in_dim),
                                      jnp.float32, -bound, bound)
            w_hh = jax.random.uniform(next(keys), (4 * hidden, hidden),
                                      jnp.float32, -bound, bound)
            b_ih = jax.random.uniform(next(keys), (4 * hidden,),
                                      jnp.float32, -bound, bound)
            b_hh = jax.random.uniform(next(keys), (4 * hidden,),
                                      jnp.float32, -bound, bound)
            wih_l.append(w_ih.T)                             # [in_dim, 4H]
            whh_l.append(w_hh.T)                             # [H, 4H]
            b_l.append((b_ih + b_hh)[None, :])               # [1, 4H]
        params["lstm"].append({
            "w_ih_t": jnp.stack(wih_l).astype(jnp.bfloat16),  # [2, in_dim, 4H]
            "w_hh_t": jnp.stack(whh_l).astype(jnp.bfloat16),  # [2, H, 4H]
            "bias": jnp.stack(b_l),                           # [2, 1, 4H] f32
        })
        in_dim = 2 * hidden
    fc_bound = 1.0 / float(2 * hidden) ** 0.5
    w_fc = jax.random.uniform(next(keys), (embedding_dim, 2 * hidden),
                              jnp.float32, -fc_bound, fc_bound)
    b_fc = jax.random.uniform(next(keys), (embedding_dim,),
                              jnp.float32, -fc_bound, fc_bound)
    params["w_fc_t"] = w_fc.T.astype(jnp.bfloat16)            # [2H, E]
    params["b_fc"] = b_fc[None, :]
    params["bn_gamma"] = jnp.ones((1, embedding_dim), jnp.float32)
    params["bn_beta"] = jnp.zeros((1, embedding_dim), jnp.float32)
    params["bn_mean"] = jnp.zeros((1, embedding_dim), jnp.float32)
    params["bn_var"] = jnp.ones((1, embedding_dim), jnp.float32)
    return params


# ----------------------------------------------------------------------------
# Pure-JAX reference (mirrors the bf16 matmul operands, f32 accumulation)
# ----------------------------------------------------------------------------
def _ref_lstm_dir(x_tm, wih_t, whh_t, bias, reverse):
    T, B, _ = x_tm.shape
    H = whh_t.shape[0]

    def step(carry, xt):
        h, c = carry
        g = (jnp.dot(xt.astype(jnp.bfloat16), wih_t,
                     preferred_element_type=jnp.float32)
             + jnp.dot(h.astype(jnp.bfloat16), whh_t,
                       preferred_element_type=jnp.float32)
             + bias)
        i = jax.nn.sigmoid(g[:, :H])
        f = jax.nn.sigmoid(g[:, H:2 * H])
        gg = jnp.tanh(g[:, 2 * H:3 * H])
        o = jax.nn.sigmoid(g[:, 3 * H:])
        c = f * c + i * gg
        h = o * jnp.tanh(c)
        return (h, c), h

    xs = x_tm[::-1] if reverse else x_tm
    h0 = jnp.zeros((B, H), jnp.float32)
    _, ys = lax.scan(step, (h0, h0), xs)
    return ys[::-1] if reverse else ys


def reference_forward(x, masks, params, hidden, num_layers):
    x_tm = jnp.transpose(x.astype(jnp.float32), (1, 0, 2))
    layer_in = x_tm
    for l in range(num_layers):
        lp = params["lstm"][l]
        f = _ref_lstm_dir(layer_in, lp["w_ih_t"][0], lp["w_hh_t"][0],
                          lp["bias"][0], False)
        b = _ref_lstm_dir(layer_in, lp["w_ih_t"][1], lp["w_hh_t"][1],
                          lp["bias"][1], True)
        layer_in = jnp.concatenate([f, b], axis=-1)
    rnn_out = jnp.transpose(layer_in, (1, 0, 2))              # [B, T, 2H]
    m = masks.astype(jnp.float32)[:, :, None]
    pooled = jnp.sum(rnn_out * m, axis=1) / jnp.sum(m, axis=1)
    emb = jnp.dot(pooled.astype(jnp.bfloat16), params["w_fc_t"],
                  preferred_element_type=jnp.float32) + params["b_fc"]
    if x.shape[0] > 1:
        emb = ((emb - params["bn_mean"]) / jnp.sqrt(params["bn_var"] + 1e-5)
               * params["bn_gamma"] + params["bn_beta"])
    nrm = jnp.maximum(jnp.linalg.norm(emb, axis=-1, keepdims=True), 1e-12)
    return emb / nrm


# ----------------------------------------------------------------------------
if __name__ == "__main__":
    B, T, INPUT_DIM = 2, 8, 16
    HIDDEN, NUM_LAYERS, EMBED = 128, 2, 256   # small stand-ins for 1024 / 2 / 1536

    key = jax.random.PRNGKey(0)
    kx, kp = jax.random.split(key, 2)
    x = jax.random.normal(kx, (B, T, INPUT_DIM), jnp.float32)
    lengths = jnp.array([T, T - 3])
    masks = (jnp.arange(T)[None, :] < lengths[:, None]).astype(jnp.float32)

    params = init_params(kp, INPUT_DIM, HIDDEN, NUM_LAYERS, EMBED)

    fwd = jax.jit(functools.partial(neural_encoder_forward,
                                    hidden=HIDDEN, num_layers=NUM_LAYERS))
    out = jax.block_until_ready(fwd(x, masks, params))

    ref = reference_forward(x, masks, params, HIDDEN, NUM_LAYERS)
    assert out.shape == (B, EMBED), out.shape
    max_err = float(jnp.max(jnp.abs(out - ref)))
    assert max_err < 5e-3, f"mismatch vs reference: {max_err}"
    print("KERNEL_OK")
</pallas_src>

<mosaic_0001>
module attributes {stable_mosaic.version = 11 : i64} {
  func.func @_bilstm_seq_kernel(%arg0: i32, %arg1: i32, %arg2: memref<1x64x16xf32, #tpu.memory_space<vmem>>, %arg3: memref<1x16x512xbf16, #tpu.memory_space<vmem>>, %arg4: memref<1x128x512xbf16, #tpu.memory_space<vmem>>, %arg5: memref<1x1x512xf32, #tpu.memory_space<vmem>>, %arg6: memref<1x64x128xf32, #tpu.memory_space<vmem>>, %arg7: memref<8x128xf32, #tpu.memory_space<vmem>>, %arg8: memref<8x128xf32, #tpu.memory_space<vmem>>, %arg9: memref<64x512xf32, #tpu.memory_space<vmem>>) attributes {dimension_semantics = [#tpu.dimension_semantics<parallel>, #tpu.dimension_semantics<arbitrary>], iteration_bounds = array<i64: 2, 1>, scalar_prefetch = 0 : i64, scratch_operands = 3 : i64, tpu.core_type = #tpu.core_type<tc>, window_params = [{transform_indices = @transform_0, window_bounds = array<i64: 1, 64, 16>}, {transform_indices = @transform_1, window_bounds = array<i64: 1, 16, 512>}, {transform_indices = @transform_2, window_bounds = array<i64: 1, 128, 512>}, {transform_indices = @transform_3, window_bounds = array<i64: 1, 1, 512>}, {transform_indices = @transform_4, window_bounds = array<i64: 1, 64, 128>}]} {
    %c0_i32 = arith.constant 0 : i32
    %0 = arith.cmpi eq, %arg1, %c0_i32 : i32
    %1 = arith.extui %0 : i1 to i32
    %c0_i32_0 = arith.constant 0 : i32
    %2 = arith.cmpi ne, %1, %c0_i32_0 : i32
    scf.if %2 {
      %cst_16 = arith.constant 0.000000e+00 : f32
      %17 = vector.broadcast %cst_16 : f32 to vector<8x128xf32>
      %c0_17 = arith.constant 0 : index
      %c0_18 = arith.constant 0 : index
      %18 = vector.load %arg7[%c0_17, %c0_18] : memref<8x128xf32, #tpu.memory_space<vmem>>, vector<8x128xf32>
      tpu.vector_store %arg7[%c0_17, %c0_18], %17 {strides = array<i32>} : memref<8x128xf32, #tpu.memory_space<vmem>>, vector<8x128xf32>,
      %cst_19 = arith.constant 0.000000e+00 : f32
      %19 = vector.broadcast %cst_19 : f32 to vector<8x128xf32>
      %c0_20 = arith.constant 0 : index
      %c0_21 = arith.constant 0 : index
      %20 = vector.load %arg8[%c0_20, %c0_21] : memref<8x128xf32, #tpu.memory_space<vmem>>, vector<8x128xf32>
      tpu.vector_store %arg8[%c0_20, %c0_21], %19 {strides = array<i32>} : memref<8x128xf32, #tpu.memory_space<vmem>>, vector<8x128xf32>,
    } else {
    }
    %c0 = arith.constant 0 : index
    %c0_1 = arith.constant 0 : index
    %c0_2 = arith.constant 0 : index
    %3 = vector.load %arg2[%c0, %c0_1, %c0_2] : memref<1x64x16xf32, #tpu.memory_space<vmem>>, vector<1x64x16xf32>
    %4 = vector.shape_cast %3 : vector<1x64x16xf32> to vector<64x16xf32>
    %5 = arith.truncf %4 : vector<64x16xf32> to vector<64x16xbf16>
    %c0_3 = arith.constant 0 : index
    %c0_4 = arith.constant 0 : index
    %c0_5 = arith.constant 0 : index
    %6 = vector.load %arg3[%c0_3, %c0_4, %c0_5] : memref<1x16x512xbf16, #tpu.memory_space<vmem>>, vector<1x16x512xbf16>
    %7 = vector.shape_cast %6 : vector<1x16x512xbf16> to vector<16x512xbf16>
    %cst = arith.constant dense<0.000000e+00> : vector<64x512xf32>
    %8 = tpu.matmul %5, %7, %cst {dimension_numbers = #tpu.dot_dimension_numbers<[1], [0], [0], [1], [0, 0, 1, 1], [], []>} : vector<64x16xbf16>, vector<16x512xbf16>, vector<64x512xf32> -> vector<64x512xf32>
    %c0_6 = arith.constant 0 : index
    %c0_7 = arith.constant 0 : index
    %c0_8 = arith.constant 0 : index
    %9 = vector.load %arg5[%c0_6, %c0_7, %c0_8] : memref<1x1x512xf32, #tpu.memory_space<vmem>>, vector<1x1x512xf32>
    %10 = vector.shape_cast %9 : vector<1x1x512xf32> to vector<1x512xf32>
    %11 = vector.broadcast %10 : vector<1x512xf32> to vector<64x512xf32>
    %12 = arith.addf %8, %11 : vector<64x512xf32>
    %c0_9 = arith.constant 0 : index
    %c0_10 = arith.constant 0 : index
    %13 = vector.load %arg9[%c0_9, %c0_10] : memref<64x512xf32, #tpu.memory_space<vmem>>, vector<64x512xf32>
    tpu.vector_store %arg9[%c0_9, %c0_10], %12 {strides = array<i32>} : memref<64x512xf32, #tpu.memory_space<vmem>>, vector<64x512xf32>,
    %c0_11 = arith.constant 0 : index
    %c0_12 = arith.constant 0 : index
    %c0_13 = arith.constant 0 : index
    %14 = vector.load %arg4[%c0_11, %c0_12, %c0_13] : memref<1x128x512xbf16, #tpu.memory_space<vmem>>, vector<1x128x512xbf16>
    %15 = vector.shape_cast %14 : vector<1x128x512xbf16> to vector<128x512xbf16>
    %c0_i32_14 = arith.constant 0 : i32
    %c8_i32 = arith.constant 8 : i32
    %16 = arith.addi %c0_i32_14, %c8_i32 : i32
    %c1_i32 = arith.constant 1 : i32
    scf.for %arg10 = %c0_i32_14 to %16 step %c1_i32  : i32 {
      %c1_i32_16 = arith.constant 1 : i32
      %17 = arith.muli %arg10, %c1_i32_16 : i32
      %c0_i32_17 = arith.constant 0 : i32
      %18 = arith.addi %c0_i32_17, %17 : i32
      %c2_i32 = arith.constant 2 : i32
      %19 = arith.muli %c2_i32, %18 : i32
      %c7_i32 = arith.constant 7 : i32
      %20 = arith.subi %c7_i32, %19 : i32
      %21 = arith.muli %arg0, %20 : i32
      %22 = arith.addi %18, %21 : i32
      %c8_i32_18 = arith.constant 8 : i32
      %23 = arith.muli %22, %c8_i32_18 : i32
      %24 = tpu.assume_multiple %23, 8 : i32
      %25 = arith.index_cast %24 : i32 to index
      %c0_19 = arith.constant 0 : index
      %26 = vector.load %arg9[%25, %c0_19] : memref<64x512xf32, #tpu.memory_space<vmem>>, vector<8x512xf32>
      %c0_20 = arith.constant 0 : index
      %c0_21 = arith.constant 0 : index
      %27 = vector.load %arg7[%c0_20, %c0_21] : memref<8x128xf32, #tpu.memory_space<vmem>>, vector<8x128xf32>
      %28 = arith.truncf %27 : vector<8x128xf32> to vector<8x128xbf16>
      %cst_22 = arith.constant dense<0.000000e+00> : vector<8x512xf32>
      %29 = tpu.matmul %28, %15, %cst_22 {dimension_numbers = #tpu.dot_dimension_numbers<[1], [0], [0], [1], [0, 0, 1, 1], [], []>} : vector<8x128xbf16>, vector<128x512xbf16>, vector<8x512xf32> -> vector<8x512xf32>
      %30 = arith.addf %26, %29 : vector<8x512xf32>
      %31 = vector.extract_strided_slice %30 {offsets = [0, 0], sizes = [8, 128], strides = [1, 1]} : vector<8x512xf32> to vector<8x128xf32>
      %32 = arith.negf %31 : vector<8x128xf32>
      %33 = math.exp %32 : vector<8x128xf32>
      %cst_23 = arith.constant 1.000000e+00 : f32
      %34 = vector.broadcast %cst_23 : f32 to vector<8x128xf32>
      %35 = arith.addf %34, %33 : vector<8x128xf32>
      %36 = arith.divf %34, %35 : vector<8x128xf32>
      %37 = vector.extract_strided_slice %30 {offsets = [0, 128], sizes = [8, 128], strides = [1, 1]} : vector<8x512xf32> to vector<8x128xf32>
      %38 = arith.negf %37 : vector<8x128xf32>
      %39 = math.exp %38 : vector<8x128xf32>
      %cst_24 = arith.constant 1.000000e+00 : f32
      %40 = vector.broadcast %cst_24 : f32 to vector<8x128xf32>
      %41 = arith.addf %40, %39 : vector<8x128xf32>
      %42 = arith.divf %40, %41 : vector<8x128xf32>
      %43 = vector.extract_strided_slice %30 {offsets = [0, 256], sizes = [8, 128], strides = [1, 1]} : vector<8x512xf32> to vector<8x128xf32>
      %44 = math.tanh %43 : vector<8x128xf32>
      %45 = vector.extract_strided_slice %30 {offsets = [0, 384], sizes = [8, 128], strides = [1, 1]} : vector<8x512xf32> to vector<8x128xf32>
      %46 = arith.negf %45 : vector<8x128xf32>
      %47 = math.exp %46 : vector<8x128xf32>
      %cst_25 = arith.constant 1.000000e+00 : f32
      %48 = vector.broadcast %cst_25 : f32 to vector<8x128xf32>
      %49 = arith.addf %48, %47 : vector<8x128xf32>
      %50 = arith.divf %48, %49 : vector<8x128xf32>
      %c0_26 = arith.constant 0 : index
      %c0_27 = arith.constant 0 : index
      %51 = vector.load %arg8[%c0_26, %c0_27] : memref<8x128xf32, #tpu.memory_space<vmem>>, vector<8x128xf32>
      %52 = arith.mulf %42, %51 : vector<8x128xf32>
      %53 = arith.mulf %36, %44 : vector<8x128xf32>
      %54 = arith.addf %52, %53 : vector<8x128xf32>
      %55 = math.tanh %54 : vector<8x128xf32>
      %56 = arith.mulf %50, %55 : vector<8x128xf32>
      %c0_28 = arith.constant 0 : index
      %c0_29 = arith.constant 0 : index
      %57 = vector.load %arg8[%c0_28, %c0_29] : memref<8x128xf32, #tpu.memory_space<vmem>>, vector<8x128xf32>
      tpu.vector_store %arg8[%c0_28, %c0_29], %54 {strides = array<i32>} : memref<8x128xf32, #tpu.memory_space<vmem>>, vector<8x128xf32>,
      %c0_30 = arith.constant 0 : index
      %c0_31 = arith.constant 0 : index
      %58 = vector.load %arg7[%c0_30, %c0_31] : memref<8x128xf32, #tpu.memory_space<vmem>>, vector<8x128xf32>
      tpu.vector_store %arg7[%c0_30, %c0_31], %56 {strides = array<i32>} : memref<8x128xf32, #tpu.memory_space<vmem>>, vector<8x128xf32>,
      %c0_32 = arith.constant 0 : index
      %59 = arith.index_cast %24 : i32 to index
      %c0_33 = arith.constant 0 : index
      %60 = vector.load %arg6[%c0_32, %59, %c0_33] : memref<1x64x128xf32, #tpu.memory_space<vmem>>, vector<1x8x128xf32>
      %61 = vector.shape_cast %60 : vector<1x8x128xf32> to vector<8x128xf32>
      %62 = vector.shape_cast %56 : vector<8x128xf32> to vector<1x8x128xf32>
      tpu.vector_store %arg6[%c0_32, %59, %c0_33], %62 {strides = array<i32>} : memref<1x64x128xf32, #tpu.memory_space<vmem>>, vector<1x8x128xf32>,
    }
    %c8_i32_15 = arith.constant 8 : i32
    return
  }
  func.func @transform_0(%arg0: i32, %arg1: i32) -> (i32, i32, i32) {
    %c2_i32 = arith.constant 2 : i32
    %0 = arith.muli %c2_i32, %arg1 : i32
    %c0_i32 = arith.constant 0 : i32
    %1 = arith.subi %c0_i32, %0 : i32
    %2 = arith.muli %arg0, %1 : i32
    %3 = arith.addi %arg1, %2 : i32
    %c0_i32_0 = arith.constant 0 : i32
    %c0_i32_1 = arith.constant 0 : i32
    %c0_i32_2 = arith.constant 0 : i32
    return %3, %c0_i32_0, %c0_i32_1 : i32, i32, i32
  }
  func.func @transform_1(%arg0: i32, %arg1: i32) -> (i32, i32, i32) {
    %c0_i32 = arith.constant 0 : i32
    %c0_i32_0 = arith.constant 0 : i32
    %c0_i32_1 = arith.constant 0 : i32
    return %arg0, %c0_i32, %c0_i32_0 : i32, i32, i32
  }
  func.func @transform_2(%arg0: i32, %arg1: i32) -> (i32, i32, i32) {
    %c0_i32 = arith.constant 0 : i32
    %c0_i32_0 = arith.constant 0 : i32
    %c0_i32_1 = arith.constant 0 : i32
    return %arg0, %c0_i32, %c0_i32_0 : i32, i32, i32
  }
  func.func @transform_3(%arg0: i32, %arg1: i32) -> (i32, i32, i32) {
    %c0_i32 = arith.constant 0 : i32
    %c0_i32_0 = arith.constant 0 : i32
    %c0_i32_1 = arith.constant 0 : i32
    return %arg0, %c0_i32, %c0_i32_0 : i32, i32, i32
  }
  func.func @transform_4(%arg0: i32, %arg1: i32) -> (i32, i32, i32) {
    %c2_i32 = arith.constant 2 : i32
    %0 = arith.muli %c2_i32, %arg1 : i32
    %c0_i32 = arith.constant 0 : i32
    %1 = arith.subi %c0_i32, %0 : i32
    %2 = arith.muli %arg0, %1 : i32
    %3 = arith.addi %arg1, %2 : i32
    %c0_i32_0 = arith.constant 0 : i32
    %c0_i32_1 = arith.constant 0 : i32
    return %3, %c0_i32_0, %arg0 : i32, i32, i32
  }
}

module attributes {stable_mosaic.version = 11 : i64} {
  func.func @_head_kernel(%arg0: memref<8x256xf32, #tpu.memory_space<vmem>>, %arg1: memref<8x8xf32, #tpu.memory_space<vmem>>, %arg2: memref<256x256xbf16, #tpu.memory_space<vmem>>, %arg3: memref<1x256xf32, #tpu.memory_space<vmem>>, %arg4: memref<1x256xf32, #tpu.memory_space<vmem>>, %arg5: memref<1x256xf32, #tpu.memory_space<vmem>>, %arg6: memref<1x256xf32, #tpu.memory_space<vmem>>, %arg7: memref<1x256xf32, #tpu.memory_space<vmem>>, %arg8: memref<8x256xf32, #tpu.memory_space<vmem>>) attributes {dimension_semantics = [], scalar_prefetch = 0 : i64, scratch_operands = 0 : i64, tpu.core_type = #tpu.core_type<tc>} {
    %c0 = arith.constant 0 : index
    %c0_0 = arith.constant 0 : index
    %0 = vector.load %arg1[%c0, %c0_0] : memref<8x8xf32, #tpu.memory_space<vmem>>, vector<8x8xf32>
    %cst = arith.constant dense<0.000000e+00> : vector<8xf32>
    %1 = vector.multi_reduction <add>, %0, %cst [1] : vector<8x8xf32> to vector<8xf32>
    %2 = vector.shape_cast %1 : vector<8xf32> to vector<8x1xf32>
    %c0_1 = arith.constant 0 : index
    %c0_2 = arith.constant 0 : index
    %3 = vector.load %arg0[%c0_1, %c0_2] : memref<8x256xf32, #tpu.memory_space<vmem>>, vector<8x256xf32>
    %4 = vector.broadcast %2 : vector<8x1xf32> to vector<8x256xf32>
    %5 = arith.divf %3, %4 : vector<8x256xf32>
    %6 = arith.truncf %5 : vector<8x256xf32> to vector<8x256xbf16>
    %c0_3 = arith.constant 0 : index
    %c0_4 = arith.constant 0 : index
    %7 = vector.load %arg2[%c0_3, %c0_4] : memref<256x256xbf16, #tpu.memory_space<vmem>>, vector<256x256xbf16>
    %cst_5 = arith.constant dense<0.000000e+00> : vector<8x256xf32>
    %8 = tpu.matmul %6, %7, %cst_5 {dimension_numbers = #tpu.dot_dimension_numbers<[1], [0], [0], [1], [0, 0, 1, 1], [], []>} : vector<8x256xbf16>, vector<256x256xbf16>, vector<8x256xf32> -> vector<8x256xf32>
    %c0_6 = arith.constant 0 : index
    %c0_7 = arith.constant 0 : index
    %9 = vector.load %arg3[%c0_6, %c0_7] : memref<1x256xf32, #tpu.memory_space<vmem>>, vector<1x256xf32>
    %10 = vector.broadcast %9 : vector<1x256xf32> to vector<8x256xf32>
    %11 = arith.addf %8, %10 : vector<8x256xf32>
    %c0_8 = arith.constant 0 : index
    %c0_9 = arith.constant 0 : index
    %12 = vector.load %arg7[%c0_8, %c0_9] : memref<1x256xf32, #tpu.memory_space<vmem>>, vector<1x256xf32>
    %cst_10 = arith.constant 9.99999974E-6 : f32
    %13 = vector.broadcast %cst_10 : f32 to vector<1x256xf32>
    %14 = arith.addf %12, %13 : vector<1x256xf32>
    %15 = math.rsqrt %14 : vector<1x256xf32>
    %c0_11 = arith.constant 0 : index
    %c0_12 = arith.constant 0 : index
    %16 = vector.load %arg6[%c0_11, %c0_12] : memref<1x256xf32, #tpu.memory_space<vmem>>, vector<1x256xf32>
    %17 = vector.broadcast %16 : vector<1x256xf32> to vector<8x256xf32>
    %18 = arith.subf %11, %17 : vector<8x256xf32>
    %19 = vector.broadcast %15 : vector<1x256xf32> to vector<8x256xf32>
    %20 = arith.mulf %18, %19 : vector<8x256xf32>
    %c0_13 = arith.constant 0 : index
    %c0_14 = arith.constant 0 : index
    %21 = vector.load %arg4[%c0_13, %c0_14] : memref<1x256xf32, #tpu.memory_space<vmem>>, vector<1x256xf32>
    %22 = vector.broadcast %21 : vector<1x256xf32> to vector<8x256xf32>
    %23 = arith.mulf %20, %22 : vector<8x256xf32>
    %c0_15 = arith.constant 0 : index
    %c0_16 = arith.constant 0 : index
    %24 = vector.load %arg5[%c0_15, %c0_16] : memref<1x256xf32, #tpu.memory_space<vmem>>, vector<1x256xf32>
    %25 = vector.broadcast %24 : vector<1x256xf32> to vector<8x256xf32>
    %26 = arith.addf %23, %25 : vector<8x256xf32>
    %27 = arith.mulf %26, %26 : vector<8x256xf32>
    %cst_17 = arith.constant dense<0.000000e+00> : vector<8xf32>
    %28 = vector.multi_reduction <add>, %27, %cst_17 [1] : vector<8x256xf32> to vector<8xf32>
    %29 = vector.shape_cast %28 : vector<8xf32> to vector<8x1xf32>
    %30 = math.sqrt %29 : vector<8x1xf32>
    %cst_18 = arith.constant 9.99999996E-13 : f32
    %31 = vector.broadcast %cst_18 : f32 to vector<8x1xf32>
    %32 = arith.maximumf %30, %31 : vector<8x1xf32>
    %33 = vector.broadcast %32 : vector<8x1xf32> to vector<8x256xf32>
    %34 = arith.divf %26, %33 : vector<8x256xf32>
    %c0_19 = arith.constant 0 : index
    %c0_20 = arith.constant 0 : index
    %35 = vector.load %arg8[%c0_19, %c0_20] : memref<8x256xf32, #tpu.memory_space<vmem>>, vector<8x256xf32>
    tpu.vector_store %arg8[%c0_19, %c0_20], %34 {strides = array<i32>} : memref<8x256xf32, #tpu.memory_space<vmem>>, vector<8x256xf32>,
    return
  }
}

module attributes {stable_mosaic.version = 11 : i64} {
  func.func @_bilstm_pool_kernel(%arg0: i32, %arg1: i32, %arg2: memref<1x64x256xf32, #tpu.memory_space<vmem>>, %arg3: memref<1x64x1xf32, #tpu.memory_space<vmem>>, %arg4: memref<1x256x512xbf16, #tpu.memory_space<vmem>>, %arg5: memref<1x128x512xbf16, #tpu.memory_space<vmem>>, %arg6: memref<1x1x512xf32, #tpu.memory_space<vmem>>, %arg7: memref<8x128xf32, #tpu.memory_space<vmem>>, %arg8: memref<8x128xf32, #tpu.memory_space<vmem>>, %arg9: memref<8x128xf32, #tpu.memory_space<vmem>>, %arg10: memref<64x512xf32, #tpu.memory_space<vmem>>) attributes {dimension_semantics = [#tpu.dimension_semantics<parallel>, #tpu.dimension_semantics<arbitrary>], iteration_bounds = array<i64: 2, 1>, scalar_prefetch = 0 : i64, scratch_operands = 3 : i64, tpu.core_type = #tpu.core_type<tc>, window_params = [{transform_indices = @transform_0, window_bounds = array<i64: 1, 64, 256>}, {transform_indices = @transform_1, window_bounds = array<i64: 1, 64, 1>}, {transform_indices = @transform_2, window_bounds = array<i64: 1, 256, 512>}, {transform_indices = @transform_3, window_bounds = array<i64: 1, 128, 512>}, {transform_indices = @transform_4, window_bounds = array<i64: 1, 1, 512>}, {transform_indices = @transform_5, window_bounds = array<i64: 8, 128>}]} {
    %c0_i32 = arith.constant 0 : i32
    %0 = arith.cmpi eq, %arg1, %c0_i32 : i32
    %1 = arith.extui %0 : i1 to i32
    %c0_i32_0 = arith.constant 0 : i32
    %2 = arith.cmpi ne, %1, %c0_i32_0 : i32
    scf.if %2 {
      %cst_18 = arith.constant 0.000000e+00 : f32
      %20 = vector.broadcast %cst_18 : f32 to vector<8x128xf32>
      %c0_19 = arith.constant 0 : index
      %c0_20 = arith.constant 0 : index
      %21 = vector.load %arg7[%c0_19, %c0_20] : memref<8x128xf32, #tpu.memory_space<vmem>>, vector<8x128xf32>
      tpu.vector_store %arg7[%c0_19, %c0_20], %20 {strides = array<i32>} : memref<8x128xf32, #tpu.memory_space<vmem>>, vector<8x128xf32>,
    } else {
    }
    %c0_i32_1 = arith.constant 0 : i32
    %3 = arith.cmpi eq, %arg1, %c0_i32_1 : i32
    %4 = arith.extui %3 : i1 to i32
    %c0_i32_2 = arith.constant 0 : i32
    %5 = arith.cmpi ne, %4, %c0_i32_2 : i32
    scf.if %5 {
      %cst_18 = arith.constant 0.000000e+00 : f32
      %20 = vector.broadcast %cst_18 : f32 to vector<8x128xf32>
      %c0_19 = arith.constant 0 : index
      %c0_20 = arith.constant 0 : index
      %21 = vector.load %arg8[%c0_19, %c0_20] : memref<8x128xf32, #tpu.memory_space<vmem>>, vector<8x128xf32>
      tpu.vector_store %arg8[%c0_19, %c0_20], %20 {strides = array<i32>} : memref<8x128xf32, #tpu.memory_space<vmem>>, vector<8x128xf32>,
      %cst_21 = arith.constant 0.000000e+00 : f32
      %22 = vector.broadcast %cst_21 : f32 to vector<8x128xf32>
      %c0_22 = arith.constant 0 : index
      %c0_23 = arith.constant 0 : index
      %23 = vector.load %arg9[%c0_22, %c0_23] : memref<8x128xf32, #tpu.memory_space<vmem>>, vector<8x128xf32>
      tpu.vector_store %arg9[%c0_22, %c0_23], %22 {strides = array<i32>} : memref<8x128xf32, #tpu.memory_space<vmem>>, vector<8x128xf32>,
    } else {
    }
    %c0 = arith.constant 0 : index
    %c0_3 = arith.constant 0 : index
    %c0_4 = arith.constant 0 : index
    %6 = vector.load %arg2[%c0, %c0_3, %c0_4] : memref<1x64x256xf32, #tpu.memory_space<vmem>>, vector<1x64x256xf32>
    %7 = vector.shape_cast %6 : vector<1x64x256xf32> to vector<64x256xf32>
    %8 = arith.truncf %7 : vector<64x256xf32> to vector<64x256xbf16>
    %c0_5 = arith.constant 0 : index
    %c0_6 = arith.constant 0 : index
    %c0_7 = arith.constant 0 : index
    %9 = vector.load %arg4[%c0_5, %c0_6, %c0_7] : memref<1x256x512xbf16, #tpu.memory_space<vmem>>, vector<1x256x512xbf16>
    %10 = vector.shape_cast %9 : vector<1x256x512xbf16> to vector<256x512xbf16>
    %cst = arith.constant dense<0.000000e+00> : vector<64x512xf32>
    %11 = tpu.matmul %8, %10, %cst {dimension_numbers = #tpu.dot_dimension_numbers<[1], [0], [0], [1], [0, 0, 1, 1], [], []>} : vector<64x256xbf16>, vector<256x512xbf16>, vector<64x512xf32> -> vector<64x512xf32>
    %c0_8 = arith.constant 0 : index
    %c0_9 = arith.constant 0 : index
    %c0_10 = arith.constant 0 : index
    %12 = vector.load %arg6[%c0_8, %c0_9, %c0_10] : memref<1x1x512xf32, #tpu.memory_space<vmem>>, vector<1x1x512xf32>
    %13 = vector.shape_cast %12 : vector<1x1x512xf32> to vector<1x512xf32>
    %14 = vector.broadcast %13 : vector<1x512xf32> to vector<64x512xf32>
    %15 = arith.addf %11, %14 : vector<64x512xf32>
    %c0_11 = arith.constant 0 : index
    %c0_12 = arith.constant 0 : index
    %16 = vector.load %arg10[%c0_11, %c0_12] : memref<64x512xf32, #tpu.memory_space<vmem>>, vector<64x512xf32>
    tpu.vector_store %arg10[%c0_11, %c0_12], %15 {strides = array<i32>} : memref<64x512xf32, #tpu.memory_space<vmem>>, vector<64x512xf32>,
    %c0_13 = arith.constant 0 : index
    %c0_14 = arith.constant 0 : index
    %c0_15 = arith.constant 0 : index
    %17 = vector.load %arg5[%c0_13, %c0_14, %c0_15] : memref<1x128x512xbf16, #tpu.memory_space<vmem>>, vector<1x128x512xbf16>
    %18 = vector.shape_cast %17 : vector<1x128x512xbf16> to vector<128x512xbf16>
    %c0_i32_16 = arith.constant 0 : i32
    %c8_i32 = arith.constant 8 : i32
    %19 = arith.addi %c0_i32_16, %c8_i32 : i32
    %c1_i32 = arith.constant 1 : i32
    scf.for %arg11 = %c0_i32_16 to %19 step %c1_i32  : i32 {
      %c1_i32_18 = arith.constant 1 : i32
      %20 = arith.muli %arg11, %c1_i32_18 : i32
      %c0_i32_19 = arith.constant 0 : i32
      %21 = arith.addi %c0_i32_19, %20 : i32
      %c2_i32 = arith.constant 2 : i32
      %22 = arith.muli %c2_i32, %21 : i32
      %c7_i32 = arith.constant 7 : i32
      %23 = arith.subi %c7_i32, %22 : i32
      %24 = arith.muli %arg0, %23 : i32
      %25 = arith.addi %21, %24 : i32
      %c8_i32_20 = arith.constant 8 : i32
      %26 = arith.muli %25, %c8_i32_20 : i32
      %27 = tpu.assume_multiple %26, 8 : i32
      %28 = arith.index_cast %27 : i32 to index
      %c0_21 = arith.constant 0 : index
      %29 = vector.load %arg10[%28, %c0_21] : memref<64x512xf32, #tpu.memory_space<vmem>>, vector<8x512xf32>
      %c0_22 = arith.constant 0 : index
      %c0_23 = arith.constant 0 : index
      %30 = vector.load %arg8[%c0_22, %c0_23] : memref<8x128xf32, #tpu.memory_space<vmem>>, vector<8x128xf32>
      %31 = arith.truncf %30 : vector<8x128xf32> to vector<8x128xbf16>
      %cst_24 = arith.constant dense<0.000000e+00> : vector<8x512xf32>
      %32 = tpu.matmul %31, %18, %cst_24 {dimension_numbers = #tpu.dot_dimension_numbers<[1], [0], [0], [1], [0, 0, 1, 1], [], []>} : vector<8x128xbf16>, vector<128x512xbf16>, vector<8x512xf32> -> vector<8x512xf32>
      %33 = arith.addf %29, %32 : vector<8x512xf32>
      %34 = vector.extract_strided_slice %33 {offsets = [0, 0], sizes = [8, 128], strides = [1, 1]} : vector<8x512xf32> to vector<8x128xf32>
      %35 = arith.negf %34 : vector<8x128xf32>
      %36 = math.exp %35 : vector<8x128xf32>
      %cst_25 = arith.constant 1.000000e+00 : f32
      %37 = vector.broadcast %cst_25 : f32 to vector<8x128xf32>
      %38 = arith.addf %37, %36 : vector<8x128xf32>
      %39 = arith.divf %37, %38 : vector<8x128xf32>
      %40 = vector.extract_strided_slice %33 {offsets = [0, 128], sizes = [8, 128], strides = [1, 1]} : vector<8x512xf32> to vector<8x128xf32>
      %41 = arith.negf %40 : vector<8x128xf32>
      %42 = math.exp %41 : vector<8x128xf32>
      %cst_26 = arith.constant 1.000000e+00 : f32
      %43 = vector.broadcast %cst_26 : f32 to vector<8x128xf32>
      %44 = arith.addf %43, %42 : vector<8x128xf32>
      %45 = arith.divf %43, %44 : vector<8x128xf32>
      %46 = vector.extract_strided_slice %33 {offsets = [0, 256], sizes = [8, 128], strides = [1, 1]} : vector<8x512xf32> to vector<8x128xf32>
      %47 = math.tanh %46 : vector<8x128xf32>
      %48 = vector.extract_strided_slice %33 {offsets = [0, 384], sizes = [8, 128], strides = [1, 1]} : vector<8x512xf32> to vector<8x128xf32>
      %49 = arith.negf %48 : vector<8x128xf32>
      %50 = math.exp %49 : vector<8x128xf32>
      %cst_27 = arith.constant 1.000000e+00 : f32
      %51 = vector.broadcast %cst_27 : f32 to vector<8x128xf32>
      %52 = arith.addf %51, %50 : vector<8x128xf32>
      %53 = arith.divf %51, %52 : vector<8x128xf32>
      %c0_28 = arith.constant 0 : index
      %c0_29 = arith.constant 0 : index
      %54 = vector.load %arg9[%c0_28, %c0_29] : memref<8x128xf32, #tpu.memory_space<vmem>>, vector<8x128xf32>
      %55 = arith.mulf %45, %54 : vector<8x128xf32>
      %56 = arith.mulf %39, %47 : vector<8x128xf32>
      %57 = arith.addf %55, %56 : vector<8x128xf32>
      %58 = math.tanh %57 : vector<8x128xf32>
      %59 = arith.mulf %53, %58 : vector<8x128xf32>
      %c0_30 = arith.constant 0 : index
      %c0_31 = arith.constant 0 : index
      %60 = vector.load %arg9[%c0_30, %c0_31] : memref<8x128xf32, #tpu.memory_space<vmem>>, vector<8x128xf32>
      tpu.vector_store %arg9[%c0_30, %c0_31], %57 {strides = array<i32>} : memref<8x128xf32, #tpu.memory_space<vmem>>, vector<8x128xf32>,
      %c0_32 = arith.constant 0 : index
      %c0_33 = arith.constant 0 : index
      %61 = vector.load %arg8[%c0_32, %c0_33] : memref<8x128xf32, #tpu.memory_space<vmem>>, vector<8x128xf32>
      tpu.vector_store %arg8[%c0_32, %c0_33], %59 {strides = array<i32>} : memref<8x128xf32, #tpu.memory_space<vmem>>, vector<8x128xf32>,
      %c0_34 = arith.constant 0 : index
      %c0_35 = arith.constant 0 : index
      %62 = vector.load %arg7[%c0_34, %c0_35] : memref<8x128xf32, #tpu.memory_space<vmem>>, vector<8x128xf32>
      %c0_36 = arith.constant 0 : index
      %63 = arith.index_cast %27 : i32 to index
      %c0_37 = arith.constant 0 : index
      %64 = vector.load %arg3[%c0_36, %63, %c0_37] : memref<1x64x1xf32, #tpu.memory_space<vmem>>, vector<1x8x1xf32>
      %65 = vector.shape_cast %64 : vector<1x8x1xf32> to vector<8x1xf32>
      %66 = vector.broadcast %65 : vector<8x1xf32> to vector<8x128xf32>
      %67 = arith.mulf %66, %59 : vector<8x128xf32>
      %68 = arith.addf %62, %67 : vector<8x128xf32>
      %c0_38 = arith.constant 0 : index
      %c0_39 = arith.constant 0 : index
      %69 = vector.load %arg7[%c0_38, %c0_39] : memref<8x128xf32, #tpu.memory_space<vmem>>, vector<8x128xf32>
      tpu.vector_store %arg7[%c0_38, %c0_39], %68 {strides = array<i32>} : memref<8x128xf32, #tpu.memory_space<vmem>>, vector<8x128xf32>,
    }
    %c8_i32_17 = arith.constant 8 : i32
    return
  }
  func.func @transform_0(%arg0: i32, %arg1: i32) -> (i32, i32, i32) {
    %c2_i32 = arith.constant 2 : i32
    %0 = arith.muli %c2_i32, %arg1 : i32
    %c0_i32 = arith.constant 0 : i32
    %1 = arith.subi %c0_i32, %0 : i32
    %2 = arith.muli %arg0, %1 : i32
    %3 = arith.addi %arg1, %2 : i32
    %c0_i32_0 = arith.constant 0 : i32
    %c0_i32_1 = arith.constant 0 : i32
    %c0_i32_2 = arith.constant 0 : i32
    return %3, %c0_i32_0, %c0_i32_1 : i32, i32, i32
  }
  func.func @transform_1(%arg0: i32, %arg1: i32) -> (i32, i32, i32) {
    %c2_i32 = arith.constant 2 : i32
    %0 = arith.muli %c2_i32, %arg1 : i32
    %c0_i32 = arith.constant 0 : i32
    %1 = arith.subi %c0_i32, %0 : i32
    %2 = arith.muli %arg0, %1 : i32
    %3 = arith.addi %arg1, %2 : i32
    %c0_i32_0 = arith.constant 0 : i32
    %c0_i32_1 = arith.constant 0 : i32
    %c0_i32_2 = arith.constant 0 : i32
    return %3, %c0_i32_0, %c0_i32_1 : i32, i32, i32
  }
  func.func @transform_2(%arg0: i32, %arg1: i32) -> (i32, i32, i32) {
    %c0_i32 = arith.constant 0 : i32
    %c0_i32_0 = arith.constant 0 : i32
    %c0_i32_1 = arith.constant 0 : i32
    return %arg0, %c0_i32, %c0_i32_0 : i32, i32, i32
  }
  func.func @transform_3(%arg0: i32, %arg1: i32) -> (i32, i32, i32) {
    %c0_i32 = arith.constant 0 : i32
    %c0_i32_0 = arith.constant 0 : i32
    %c0_i32_1 = arith.constant 0 : i32
    return %arg0, %c0_i32, %c0_i32_0 : i32, i32, i32
  }
  func.func @transform_4(%arg0: i32, %arg1: i32) -> (i32, i32, i32) {
    %c0_i32 = arith.constant 0 : i32
    %c0_i32_0 = arith.constant 0 : i32
    %c0_i32_1 = arith.constant 0 : i32
    return %arg0, %c0_i32, %c0_i32_0 : i32, i32, i32
  }
  func.func @transform_5(%arg0: i32, %arg1: i32) -> (i32, i32) {
    %c0_i32 = arith.constant 0 : i32
    %c0_i32_0 = arith.constant 0 : i32
    return %c0_i32, %arg0 : i32, i32
  }
}

</mosaic_0001>

<bundles_post_ra>
// kernel: neural_encoder_forward.5
= control target key start
LH: loop header
LB: loop body
LE: loop exit
PB: predicated region body
PF: predicated region fallthrough
CT: control target
= control target key end

     0   :  { %vm30_vm0 = vcmask 64512   ;;  %v75_v44 = vlaneseq  ;;  %s625_s1 = inlined_call_operand.vmem [shape: f32[8,8], index: 1, kind: input, shape index: {}]   ;;  %s626_s2 = inlined_call_operand.vmem [shape: bf16[256,256], index: 2, kind: input, shape index: {}]   ;;  %s627_s0 = inlined_call_operand.vmem [shape: f32[8,256], index: 0, kind: input, shape index: {}]   ;;  %s628_s7 = inlined_call_operand.vmem [shape: f32[1,256], index: 7, kind: input, shape index: {}]   ;;  %s629_s3 = inlined_call_operand.vmem [shape: f32[1,256], index: 3, kind: input, shape index: {}]   ;;  %s630_s6 = inlined_call_operand.vmem [shape: f32[1,256], index: 6, kind: input, shape index: {}]   ;;  %s631_s4 = inlined_call_operand.vmem [shape: f32[1,256], index: 4, kind: input, shape index: {}]   ;;  %s632_s5 = inlined_call_operand.vmem [shape: f32[1,256], index: 5, kind: input, shape index: {}]   ;;  %s633_s8 = inlined_call_operand.vmem [shape: f32[8,256], index: 8, kind: output, shape index: {}]  }
   0x1   :  { %v29_v0 = vld [vmem:[%s625_s1] sm:$0xff]  ;;  %v398_v2 = vld [vmem:[%s626_s2 + $0x74] ss:$8 sps:$4 sm:$0xff]   ;;  %v400_v3 = vld [vmem:[%s626_s2 + $0x70] ss:$8 sps:$4 sm:$0xff]  }
   0x2   :  { %v31_v1 = vsel %vm30_vm0, %v29_v0, 0.0  ;;  %v401_v4 = vld [vmem:[%s626_s2 + $0x64] ss:$8 sps:$4 sm:$0xff]   ;;  %245 = vmatprep.subr.bf16.mxu0 %v398_v2  ;;  %v403_v5 = vld [vmem:[%s626_s2 + $0x60] ss:$8 sps:$4 sm:$0xff]   ;;  %v76_v45 = vshrl.u32 %v75_v44, 7 }
   0x3   :  { %32 = vadd.xlane.f32.xlu0 %v31_v1  ;;  %246 = vmatpush1.bf16.msra.mxu0 %v400_v3  ;;  %v404_v6 = vld [vmem:[%s626_s2 + $0x54] ss:$8 sps:$4 sm:$0xff]   ;;  %v406_v7 = vld [vmem:[%s626_s2 + $0x50] ss:$8 sps:$4 sm:$0xff]   ;;  %v407_v8 = vld [vmem:[%s626_s2 + $0x44] ss:$8 sps:$4 sm:$0xff]  }
   0x4   :  { %247 = vmatprep.subr.bf16.mxu0 %v401_v4  ;;  %v409_v9 = vld [vmem:[%s626_s2 + $0x40] ss:$8 sps:$4 sm:$0xff]   ;;  %v410_v10 = vld [vmem:[%s626_s2 + $0x34] ss:$8 sps:$4 sm:$0xff]   ;;  %v412_v11 = vld [vmem:[%s626_s2 + $0x30] ss:$8 sps:$4 sm:$0xff]  }
   0x5   :  { %v413_v12 = vld [vmem:[%s626_s2 + $0x24] ss:$8 sps:$4 sm:$0xff]   ;;  %v415_v13 = vld [vmem:[%s626_s2 + $0x20] ss:$8 sps:$4 sm:$0xff]   ;;  %v416_v14 = vld [vmem:[%s626_s2 + $0x14] ss:$8 sps:$4 sm:$0xff]  }
   0x6   :  { %v418_v15 = vld [vmem:[%s626_s2 + $0x10] ss:$8 sps:$4 sm:$0xff]   ;;  %v419_v16 = vld [vmem:[%s626_s2 + $0x4] ss:$8 sps:$4 sm:$0xff]   ;;  %v421_v17 = vld [vmem:[%s626_s2] ss:$8 sps:$4 sm:$0xff]  }
   0x7   :  { %248 = vmatpush1.bf16.msra.mxu0 %v403_v5  ;;  %v422_v18 = vld [vmem:[%s626_s2 + $0xf4] ss:$8 sps:$4 sm:$0xff]   ;;  %v424_v19 = vld [vmem:[%s626_s2 + $0xf0] ss:$8 sps:$4 sm:$0xff]   ;;  %v425_v20 = vld [vmem:[%s626_s2 + $0xe4] ss:$8 sps:$4 sm:$0xff]  }
   0x8   :  { %249 = vmatprep.subr.bf16.mxu0 %v404_v6  ;;  %v427_v21 = vld [vmem:[%s626_s2 + $0xe0] ss:$8 sps:$4 sm:$0xff]   ;;  %v428_v22 = vld [vmem:[%s626_s2 + $0xd4] ss:$8 sps:$4 sm:$0xff]   ;;  %v430_v23 = vld [vmem:[%s626_s2 + $0xd0] ss:$8 sps:$4 sm:$0xff]  }
   0x9   :  { %v431_v24 = vld [vmem:[%s626_s2 + $0xc4] ss:$8 sps:$4 sm:$0xff]   ;;  %v433_v25 = vld [vmem:[%s626_s2 + $0xc0] ss:$8 sps:$4 sm:$0xff]   ;;  %v434_v26 = vld [vmem:[%s626_s2 + $0xb4] ss:$8 sps:$4 sm:$0xff]  }
   0xa   :  { %v436_v27 = vld [vmem:[%s626_s2 + $0xb0] ss:$8 sps:$4 sm:$0xff]   ;;  %v437_v28 = vld [vmem:[%s626_s2 + $0xa4] ss:$8 sps:$4 sm:$0xff]   ;;  %v439_v29 = vld [vmem:[%s626_s2 + $0xa0] ss:$8 sps:$4 sm:$0xff]  }
   0xb   :  { %250 = vmatpush1.bf16.msra.mxu0 %v406_v7  ;;  %v440_v30 = vld [vmem:[%s626_s2 + $0x94] ss:$8 sps:$4 sm:$0xff]   ;;  %v442_v31 = vld [vmem:[%s626_s2 + $0x90] ss:$8 sps:$4 sm:$0xff]   ;;  %v443_v32 = vld [vmem:[%s626_s2 + $0x84] ss:$8 sps:$4 sm:$0xff]  }
   0xc   :  { %251 = vmatprep.subr.bf16.mxu0 %v407_v8  ;;  %v445_v33 = vld [vmem:[%s626_s2 + $0x80] ss:$8 sps:$4 sm:$0xff]   ;;  %v77_v46 = vsub.s32 0, %v76_v45  ;;  %v81_v48 = vsub.s32 1, %v76_v45 }
   0xd   :  { %v34_v35 = vld [vmem:[%s627_s0] sm:$0xff]  ;;  %v35_v36 = vld [vmem:[%s627_s0 + $0x8] sm:$0xff] }
   0xe   :  { %v286_v42 = vld [vmem:[%s628_s7] sm:$0x3] }
   0xf   :  { %252 = vmatpush1.bf16.msra.mxu0 %v409_v9  ;;  %v287_v43 = vadd.f32 1e-05, %v286_v42  ;;  %v73_v47 = vld [vmem:[%s629_s3] sm:$0x3] }
  0x10   :  { %253 = vmatprep.subr.bf16.mxu0 %v410_v10  ;;  %v289_v49 = vld [vmem:[%s630_s6] sm:$0x3]  ;;  %v78_v50 = vrot.slane %v73_v47, %v77_v46  ;;  %v82_v53 = vrot.slane %v73_v47, %v81_v48 }
  0x11   :  { %v294_v52 = vrot.slane %v289_v49, %v77_v46  ;;  %v316_v55 = vld [vmem:[%s631_s4] sm:$0x3]  ;;  %v298_v58 = vrot.slane %v289_v49, %v81_v48 }
  0x12   :  { %v330_v60 = vld [vmem:[%s632_s5] sm:$0x3]  ;;  %v321_v62 = vrot.slane %v316_v55, %v77_v46  ;;  %v325_v4 = vrot.slane %v316_v55, %v81_v48 }
  0x13   :  { %254 = vmatpush1.bf16.msra.mxu0 %v412_v11  ;;  %v335_v5 = vrot.slane %v330_v60, %v77_v46  ;;  %v339_v9 = vrot.slane %v330_v60, %v81_v48 }
  0x14   :  { %255 = vmatprep.subr.bf16.mxu0 %v413_v12 }
  0x17   :  { %256 = vmatpush1.bf16.msra.mxu0 %v415_v13 }
  0x18   :  { %257 = vmatprep.subr.bf16.mxu0 %v416_v14 }
  0x1b   :  { %258 = vmatpush1.bf16.msra.mxu0 %v418_v15 }
  0x1c   :  { %259 = vmatprep.subr.bf16.mxu0 %v419_v16 }
  0x1f   :  { %260 = vmatpush1.bf16.msra.mxu0 %v421_v17 }
  0x20   :  { %261 = vmatprep.subr.bf16.mxu0 %v422_v18 }
  0x23   :  { %262 = vmatpush2.bf16.msra.mxu0 %v424_v19 }
  0x24   :  { %263 = vmatprep.subr.bf16.mxu0 %v425_v20 }
  0x27   :  { %264 = vmatpush2.bf16.msra.mxu0 %v427_v21 }
  0x28   :  { %265 = vmatprep.subr.bf16.mxu0 %v428_v22 }
  0x2b   :  { %266 = vmatpush2.bf16.msra.mxu0 %v430_v23 }
  0x2c   :  { %267 = vmatprep.subr.bf16.mxu0 %v431_v24 }
  0x2f   :  { %268 = vmatpush2.bf16.msra.mxu0 %v433_v25 }
  0x30   :  { %269 = vmatprep.subr.bf16.mxu0 %v434_v26 }
  0x33   :  { %270 = vmatpush2.bf16.msra.mxu0 %v436_v27 }
  0x34   :  { %271 = vmatprep.subr.bf16.mxu0 %v437_v28 }
  0x37   :  { %272 = vmatpush2.bf16.msra.mxu0 %v439_v29 }
  0x38   :  { %273 = vmatprep.subr.bf16.mxu0 %v440_v30 }
  0x3b   :  { %274 = vmatpush2.bf16.msra.mxu0 %v442_v31 }
  0x3c   :  { %275 = vmatprep.subr.bf16.mxu0 %v443_v32 }
  0x3f   :  { %276 = vmatpush2.bf16.msra.mxu0 %v445_v33 }
  0x8c   :  { %v33_v34 = vpop.xlane.xlu0 %32 }
  0x8d   :  { %446 = vrcp.f32 %v33_v34 }
  0x8e   :  { %448 = vrsqrt.f32 %v287_v43 }
  0x9a   :  { %v447_v37 = vpop.eup %446 }
  0x9b   :  { %v38_v38 = vmul.f32 %v447_v37, %v35_v36  ;;  %v37_v39 = vmul.f32 %v447_v37, %v34_v35  ;;  %v449_v51 = vpop.eup %448 }
  0x9c   :  { %v307_v57 = vrot.slane %v449_v51, %v77_v46  ;;  %v311_v0 = vrot.slane %v449_v51, %v81_v48 }
  0x9d   :  { %v40_v40 = vpack.c.bf16 %v38_v38, %v38_v38  ;;  %v39_v41 = vpack.c.bf16 %v37_v39, %v37_v39 }
  0x9f   :  { %277 = vmatprep.mubr.bf16.mxu0 %v40_v40 }
  0xa0   :  { %278 = vmatmul.mubr.bf16.vlgmr.msra.gmra.mxu0 %v39_v41 }
 0x160   :  { %v279_v54 = vpop.f32.mrf.mxu0 }
 0x161   :  { %v280_v56 = vadd.f32 %v279_v54, %v78_v50 }
 0x162   :  { %v281_v59 = vpop.f32.mrf.mxu0 }
 0x163   :  { %v301_v61 = vsub.f32 %v280_v56, %v294_v52  ;;  %v282_v63 = vadd.f32 %v281_v59, %v82_v53 }
 0x164   :  { %v283_v1 = vpop.f32.mrf.mxu0 }
 0x165   :  { %v314_v2 = vmul.f32 %v307_v57, %v301_v61  ;;  %v302_v3 = vsub.f32 %v282_v63, %v298_v58 }
 0x166   :  { %v284_v6 = vpop.f32.mrf.mxu0 }
 0x167   :  { %v328_v7 = vmul.f32 %v321_v62, %v314_v2  ;;  %v315_v8 = vmul.f32 %v311_v0, %v302_v3 }
 0x169   :  { %v329_v10 = vmul.f32 %v325_v4, %v315_v8  ;;  %v342_v11 = vadd.f32 %v335_v5, %v328_v7 }
 0x16b   :  { %v343_v12 = vadd.f32 %v339_v9, %v329_v10  ;;  %v344_v13 = vmul.f32 %v342_v11, %v342_v11 }
 0x16d   :  { %v345_v14 = vmul.f32 %v343_v12, %v343_v12 }
 0x16f   :  { %v346_v15 = vadd.f32 %v345_v14, %v344_v13 }
 0x171   :  { %347 = vadd.xlane.f32.xlu0 %v346_v15 }
 0x1fa   :  { %v348_v16 = vpop.xlane.xlu0 %347 }
 0x1fb   :  { %450 = vrsqrt.f32 %v348_v16  ;;  %vm351_vm1 = vcmp.eq.f32.partialorder %v348_v16, inf  ;;  %v354_v19 = vand.u32 2147483648, %v348_v16  ;;  %vm353_vm2 = vcmp.eq.f32.partialorder %v348_v16, 0.0 }
 0x208   :  { %v451_v17 = vpop.eup %450 }
 0x209   :  { %v350_v18 = vmul.f32 %v451_v17, %v348_v16 }
 0x20b   :  { %v352_v20 = vsel %vm351_vm1, %v348_v16, %v350_v18 }
 0x20c   :  { %v355_v21 = vsel %vm353_vm2, %v354_v19, %v352_v20 }
 0x20d   :  { %v356_v22 = vmax.f32 %v355_v21, 1e-12 }
 0x20f   :  { %452 = vrcp.f32 %v356_v22 }
 0x21c   :  { %v453_v23 = vpop.eup %452 }
 0x21d   :  { %v358_v24 = vmul.f32 %v453_v23, %v342_v11  ;;  %v359_v25 = vmul.f32 %v453_v23, %v343_v12 }
 0x21f   :  { %360 = vst [vmem:[%s633_s8] sm:$0xff] %v358_v24  ;;  %361 = vst [vmem:[%s633_s8 + $0x8] sm:$0xff] %v359_v25 }

// kernel: neural_encoder_forward.3
= control target key start
LH: loop header
LB: loop body
LE: loop exit
PB: predicated region body
PF: predicated region fallthrough
CT: control target
= control target key end

     0   :  { %9 = vsyncpa [#allocation6], 0  ;;  %s1775_s0 = inlined_call_operand.vmem [shape: f32[1,64,16], index: 0, kind: input, shape index: {}]   ;;  %s1776_s1 = inlined_call_operand.vmem [shape: bf16[2,16,512], index: 1, kind: input, shape index: {}]   ;;  %s1777_s2 = inlined_call_operand.hbm [shape: bf16[2,128,512], index: 2, kind: input, shape index: {}]   ;;  %s1778_s3 = inlined_call_operand.vmem [shape: f32[2,1,512], index: 3, kind: input, shape index: {}]   ;;  %s1779_s4 = inlined_call_operand.vmem [shape: f32[1,64,256], index: 4, kind: output, shape index: {}]  }
   0x1   :  { %11 = vsyncpa [#allocation6 + $0x1], 0  ;;  %s1384_s15 = smov 0   ;;  %s1386_s16 = smov 0  }
   0x2   :  { %s1388_s17 = smov 0   ;;  %s1390_s18 = smov 0  }
   0x3   :  { %s1392_s19 = smov 0   ;;  %s1394_s20 = smov 0  }
   0x4 LB: > { %s1103_s21 = sadd.s32 4294967295, %s1347_s20   ;;  %s29_s22 = sadd.s32 1, %s1343_s19  ;;  %s1347_s20 = sphi %s1394_s20, %s17_s20   ;;  %s1343_s19 = sphi %s1392_s19, %s1788_s19   ;;  %s1339_s18 = sphi %s1390_s18, %s1787_s18   ;;  %s1335_s17 = sphi %s1388_s17, %s1786_s17   ;;  %s1331_s16 = sphi %s1386_s16, %s1785_s16   ;;  %s1327_s15 = sphi %s1384_s15, %s1784_s15  }
   0x5   : > { %p31_p0 = scmp.ge.s32.totalorder %s29_s22, 2  ;;  %s96_s23 = sadd.s32 1, %s1335_s17 }
   0x6   : > { %p103_p1 = scmp.ne.s32.totalorder %s1335_s17, %s1331_s16  ;;  %p104_p2 = scmp.eq.s32.totalorder %s1347_s20, 0 }
   0x7   : > { %s1790_s22 = smov (%p31_p0, %s29_s22), 0  ;;  %p109_p4 = scmp.ne.s32.totalorder %s1331_s16, %s1327_s15 }
   0x8   : > { %p1420_p3 = por %p104_p2, %p103_p1  ;;  %s93_s25 = ssub.s32 %s1343_s19, %s1790_s22 }
   0x9   : > { %p110_p5 = scmp.eq.s32.totalorder %s1103_s21, 0  ;;  %p94_p6 = scmp.eq.s32.totalorder %s93_s25, 0 }
   0xa   : > { %p169_p7 = scmp.eq.s32.totalorder %s1103_s21, 1  ;;  %p1181_p10 = scmp.lt.s32.totalorder %s1347_s20, 2 }
   0xb   : > { %p1427_p8 = por %p110_p5, %p109_p4  ;;  %s219_s29 = sand.u32 1, %s1335_s17  }
   0xc   : > { %s1432_s27 = scalar_select %p94_p6, %s1335_s17, %s96_s23  }
   0xd   : > { %p1434_p9 = por %p169_p7, %p103_p1  ;;  %s1172_s30 = sshll.u32 %s1343_s19, 12 }
   0xe   : > { %s1108_s5 = sshll.u32 %s219_s29, 8  ;;  %s229_s8 = scalar_lea.hbm %s1777_s2, %s1172_s30 }
   0xf   : > { %s223_s9 = scalar_lea.vmem [#allocation5], %s1108_s5  ;;  %p1446_p11 = pnand %p1181_p10, %p1420_p3 }
  0x10   : > { %s230_s10 = sshll.u32 %s223_s9, 4  ;;  %s220_s12 = scalar_lea.sflag [#allocation6], %s219_s29  ;;  %s231_s10 = int_to_ptr.vmem [resolvable:$true] %s230_s10 }
  0x11   : > { %p1267_p12 = pneg %p1446_p11  ;;  %s1278_s13 = scalar_lea.vmem %s231_s10, 4096 }
  0x12   : > { %p1279_p13 = scmp.ne.s32.totalorder %s231_s10, %s1278_s13  ;;  %s1353_s14 = smov [#allocation5]  }
  0x13   : > { %s1283_s15 = sshll.u32 %s1353_s14, 4  ;;  %s1284_s15 = int_to_ptr.vmem [resolvable:$false] %s1283_s15 }
  0x14   : > { %p1281_p0 = pnand %p1279_p13, %p1267_p12  ;;  %s1285_s21 = scalar_lea.vmem %s1284_s15, 8192 }
  0x15   : > { %p1286_p2 = scmp.lt.s32.totalorder %s231_s10, %s1284_s15  ;;  %p1287_p4 = scmp.lt.s32.totalorder %s1285_s21, %s1278_s13 }
  0x16   : > { %p1282_p1 = pneg %p1281_p0 }
  0x17   : > { %p1288_p5 = por %p1287_p4, %p1286_p2 }
  0x19   : > { %p1289_p3 = pnand %p1288_p5, %p1282_p1 }
  0x1b   : > { %1292 = shalt.err (!%p1289_p3)
}
  0x1c   : > { %s1354_s23 = smov 256   ;;  %s1355_s24 = smov 16  }
  0x1d   : > { %1180 = dma.hbm_to_vmem [thread:$0]  (!%p1446_p11), %s229_s8, 4096, %s231_s10, %s220_s12, %s1354_s23, %s1354_s23, %s1355_s24  }
  0x1e   : > { %p1111_p6 = scmp.ge.s32.totalorder %s1347_s20, 1  ;;  %p245_p7 = scmp.lt.s32.totalorder %s1347_s20, 3 }
  0x20   : > { %p246_p10 = pnand %p1111_p6, %p245_p7 }
  0x21   : > { %s1457_s25 = sand.u32 (!%p246_p10), 1, %s1331_s16  }
  0x22   : > { %249 = sbr.rel (%p246_p10) target bundleno = 579 (0x243), region = 36  ;;  %s1112_s29 = sshll.u32 (!%p246_p10), %s1457_s25, 8 }
  0x23   : > { %s252_s30 = scalar_lea.sflag (!%p246_p10), [#allocation6], %s1457_s25  ;;  %s1461_s5 = scalar_lea.vmem (!%p246_p10), [#allocation5], %s1112_s29 }
  0x27   : > { %1322 = dma.done.wait (%p1427_p8), %s252_s30, 4096  }
  0x28   : > { %1324 = vsyncadd (%p1427_p8), %s252_s30, 4294963200  ;;  %s1113_s6 = sshll.u32 %s1457_s25, 6  ;;  %v1356_v0 = vmov 0.0   ;;  %v1357_v1 = vmov 0   ;;  %p310_p8 = scmp.lt.s32.totalorder %s1339_s18, 1  ;;  %v1472_v2 = vld [vmem:[%s1461_s5] sm:$0xff]  ;;  %v348_v50 = vlaneseq }
  0x29   : > { %328 = vst [vmem:[#allocation2] sm:$0xff] %v1356_v0  ;;  %329 = vst [vmem:[#allocation3] sm:$0xff] %v1356_v0  ;;  %433 = vmatprep.mubr.bf16.mxu0 %v1357_v1  ;;  %506 = vmatprep.mubr.bf16.mxu1 %v1357_v1  ;;  %v1475_v3 = vld [vmem:[%s1461_s5 + $0x8] sm:$0xff]  ;;  %v1478_v4 = vld [vmem:[%s1461_s5 + $0x10] sm:$0xff]  ;;  %vm388_vm0 = vcmask 130048   ;;  %s1660_s21 = smov 0  }
  0x2a   : > { %v1481_v5 = vld [vmem:[%s1461_s5 + $0x18] sm:$0xff]  ;;  %v1484_v6 = vld [vmem:[%s1461_s5 + $0x20] sm:$0xff]  ;;  %v1487_v7 = vld [vmem:[%s1461_s5 + $0x28] sm:$0xff]  ;;  %s1490_s26 = scalar_select %p310_p8, %s1339_s18, 1  ;;  %v349_v51 = vshrl.u32 %v348_v50, 7 }
  0x2b   : > { %v1493_v8 = vld [vmem:[%s1461_s5 + $0x30] sm:$0xff]  ;;  %v1496_v9 = vld [vmem:[%s1461_s5 + $0x38] sm:$0xff]  ;;  %v1499_v10 = vld [vmem:[%s1461_s5 + $0x40] sm:$0xff] }
  0x2c   : > { %v1502_v11 = vld [vmem:[%s1461_s5 + $0x48] sm:$0xff]  ;;  %v1505_v12 = vld [vmem:[%s1461_s5 + $0x50] sm:$0xff]  ;;  %v1508_v13 = vld [vmem:[%s1461_s5 + $0x58] sm:$0xff]  ;;  %s1173_s7 = sshll.u32 %s1490_s26, 5  ;;  %s1116_s12 = sshll.u32 %s1490_s26, 2  ;;  %v350_v52 = vsub.s32 0, %v349_v51 }
  0x2d   : > { %v1511_v14 = vld [vmem:[%s1461_s5 + $0x60] sm:$0xff]  ;;  %v1514_v15 = vld [vmem:[%s1461_s5 + $0x68] sm:$0xff]  ;;  %v1517_v16 = vld [vmem:[%s1461_s5 + $0x70] sm:$0xff]  ;;  %s314_s10 = scalar_lea.vmem %s1776_s1, %s1173_s7  ;;  %s318_s15 = scalar_lea.vmem %s1778_s3, %s1116_s12  ;;  %v358_v53 = vsub.s32 2, %v349_v51  ;;  %v354_v55 = vsub.s32 1, %v349_v51  ;;  %v362_v56 = vsub.s32 3, %v349_v51 }
  0x2e   : > { %v1520_v17 = vld [vmem:[%s1461_s5 + $0x78] sm:$0xff]  ;;  %v1523_v18 = vld [vmem:[%s1461_s5 + $0x80] sm:$0xff]  ;;  %v1526_v19 = vld [vmem:[%s1461_s5 + $0x88] sm:$0xff]  ;;  %s1658_s26 = scalar_lea.vmem [#allocation7], %s1113_s6 }
  0x2f   : > { %v1530_v20 = vld [vmem:[%s1461_s5 + $0x90] sm:$0xff]  ;;  %v1533_v21 = vld [vmem:[%s1461_s5 + $0x98] sm:$0xff]  ;;  %v1536_v22 = vld [vmem:[%s1461_s5 + $0xa0] sm:$0xff] }
  0x30   : > { %v1539_v23 = vld [vmem:[%s1461_s5 + $0xa8] sm:$0xff]  ;;  %v1542_v24 = vld [vmem:[%s1461_s5 + $0xb0] sm:$0xff]  ;;  %v1545_v25 = vld [vmem:[%s1461_s5 + $0xb8] sm:$0xff] }
  0x31   : > { %v1548_v26 = vld [vmem:[%s1461_s5 + $0xc0] sm:$0xff]  ;;  %v1551_v27 = vld [vmem:[%s1461_s5 + $0xc8] sm:$0xff]  ;;  %v1554_v28 = vld [vmem:[%s1461_s5 + $0xd0] sm:$0xff] }
  0x32   : > { %v1560_v29 = vld [vmem:[%s1461_s5 + $0xd8] sm:$0xff]  ;;  %v1563_v30 = vld [vmem:[%s1461_s5 + $0xe0] sm:$0xff]  ;;  %v1566_v31 = vld [vmem:[%s1461_s5 + $0xe8] sm:$0xff] }
  0x33   : > { %v1569_v32 = vld [vmem:[%s1461_s5 + $0xf0] sm:$0xff]  ;;  %v1572_v33 = vld [vmem:[%s1461_s5 + $0xf8] sm:$0xff]  ;;  %v332_v41 = vld [vmem:[%s1775_s0 + $0x10] sm:$0xff] }
  0x34   : > { %v1243_v34 = vld [vmem:[%s314_s10 + $0x4] ss:$16 sps:$4 sm:$0xff]   ;;  %v1245_v35 = vld [vmem:[%s314_s10 + $0xc] ss:$16 sps:$4 sm:$0xff]   ;;  %v1247_v36 = vld [vmem:[%s314_s10] ss:$16 sps:$4 sm:$0xff]  }
  0x35   : > { %415 = vmatprep.subr.bf16.mxu0 %v1243_v34  ;;  %v1248_v37 = vld [vmem:[%s314_s10 + $0x8] ss:$16 sps:$4 sm:$0xff]   ;;  %v330_v38 = vld [vmem:[%s1775_s0] sm:$0xff]  ;;  %488 = vmatprep.subr.bf16.mxu1 %v1245_v35  ;;  %v336_v47 = vld [vmem:[%s1775_s0 + $0x30] sm:$0xff] }
  0x36   : > { %v331_v39 = vld [vmem:[%s1775_s0 + $0x8] sm:$0xff]  ;;  %416 = vmatpush1.bf16.msra.mxu0 %v1247_v36  ;;  %489 = vmatpush1.bf16.msra.mxu1 %v1248_v37  ;;  %v333_v42 = vld [vmem:[%s1775_s0 + $0x18] sm:$0xff]  ;;  %v334_v44 = vld [vmem:[%s1775_s0 + $0x20] sm:$0xff] }
  0x37   : > { %v338_v40 = vpack.c.bf16 %v331_v39, %v330_v38  ;;  %v339_v43 = vpack.c.bf16 %v333_v42, %v332_v41  ;;  %v335_v45 = vld [vmem:[%s1775_s0 + $0x28] sm:$0xff]  ;;  %v337_v48 = vld [vmem:[%s1775_s0 + $0x38] sm:$0xff]  ;;  %v346_v54 = vld [vmem:[%s318_s15] sm:$0xf] }
  0x38   : > { %v340_v46 = vpack.c.bf16 %v335_v45, %v334_v44  ;;  %v341_v49 = vpack.c.bf16 %v337_v48, %v336_v47  ;;  %v1616_v57 = vrot.slane %v346_v54, %v350_v52  ;;  %v1618_v58 = vrot.slane %v346_v54, %v358_v53 }
  0x39   : > { %1121 = vmatmul.mubr.msk.bf16.vlgmr.msra.gmra.mxu0 %vm388_vm0, %v338_v40  ;;  %1125 = vmatmul.mubr.msk.bf16.vlgmr.msra.gmra.mxu1 %vm388_vm0, %v338_v40  ;;  %v1620_v59 = vrot.slane %v346_v54, %v354_v55  ;;  %v1622_v60 = vrot.slane %v346_v54, %v362_v56 }
  0x3a   : > { %443 = vmatprep.mubr.bf16.mxu0 %v1357_v1  ;;  %516 = vmatprep.mubr.bf16.mxu1 %v1357_v1 }
  0x41   : > { %1122 = vmatmul.mubr.msk.bf16.gmra.mxu0 %vm388_vm0, %v339_v43  ;;  %1126 = vmatmul.mubr.msk.bf16.gmra.mxu1 %vm388_vm0, %v339_v43 }
  0x42   : > { %453 = vmatprep.mubr.bf16.mxu0 %v1357_v1  ;;  %526 = vmatprep.mubr.bf16.mxu1 %v1357_v1 }
  0x49   : > { %1123 = vmatmul.mubr.msk.bf16.gmra.mxu0 %vm388_vm0, %v340_v46  ;;  %1127 = vmatmul.mubr.msk.bf16.gmra.mxu1 %vm388_vm0, %v340_v46 }
  0x4a   : > { %463 = vmatprep.mubr.bf16.mxu0 %v1357_v1  ;;  %536 = vmatprep.mubr.bf16.mxu1 %v1357_v1 }
  0x51   : > { %1124 = vmatmul.mubr.msk.bf16.gmra.mxu0 %vm388_vm0, %v341_v49  ;;  %1128 = vmatmul.mubr.msk.bf16.gmra.mxu1 %vm388_vm0, %v341_v49 }
  0xf9   : > { %v435_v61 = vpop.f32.mrf.mxu0  ;;  %v508_v62 = vpop.f32.mrf.mxu1 }
  0xfa   : > { %v436_v63 = vadd.f32 %v435_v61, %v1616_v57  ;;  %v509_v0 = vadd.f32 %v508_v62, %v1618_v58 }
  0xfb   : > { %v437_v1 = vpop.f32.mrf.mxu0  ;;  %v510_v34 = vpop.f32.mrf.mxu1 }
  0xfc   : > { %547 = vst [vmem:[#allocation4] sm:$0xff] %v436_v63  ;;  %549 = vst [vmem:[#allocation4 + $0x10] sm:$0xff] %v509_v0  ;;  %v438_v35 = vadd.f32 %v437_v1, %v1620_v59  ;;  %v511_v36 = vadd.f32 %v510_v34, %v1622_v60 }
  0xfd   : > { %v439_v37 = vpop.f32.mrf.mxu0  ;;  %v512_v38 = vpop.f32.mrf.mxu1 }
  0xfe   : > { %548 = vst [vmem:[#allocation4 + $0x8] sm:$0xff] %v438_v35  ;;  %550 = vst [vmem:[#allocation4 + $0x18] sm:$0xff] %v511_v36  ;;  %v440_v39 = vadd.f32 %v439_v37, %v1616_v57  ;;  %v513_v40 = vadd.f32 %v512_v38, %v1618_v58 }
  0xff   : > { %v441_v41 = vpop.f32.mrf.mxu0  ;;  %v514_v42 = vpop.f32.mrf.mxu1 }
 0x100   : > { %551 = vst [vmem:[#allocation4 + $0x20] sm:$0xff] %v440_v39  ;;  %553 = vst [vmem:[#allocation4 + $0x30] sm:$0xff] %v513_v40  ;;  %v442_v43 = vadd.f32 %v441_v41, %v1620_v59  ;;  %v515_v44 = vadd.f32 %v514_v42, %v1622_v60 }
 0x101   : > { %v445_v45 = vpop.f32.mrf.mxu0  ;;  %v518_v46 = vpop.f32.mrf.mxu1 }
 0x102   : > { %552 = vst [vmem:[#allocation4 + $0x28] sm:$0xff] %v442_v43  ;;  %554 = vst [vmem:[#allocation4 + $0x38] sm:$0xff] %v515_v44  ;;  %v446_v47 = vadd.f32 %v445_v45, %v1616_v57  ;;  %v519_v48 = vadd.f32 %v518_v46, %v1618_v58 }
 0x103   : > { %v447_v49 = vpop.f32.mrf.mxu0  ;;  %v520_v50 = vpop.f32.mrf.mxu1 }
 0x104   : > { %555 = vst [vmem:[#allocation4 + $0x40] sm:$0xff] %v446_v47  ;;  %557 = vst [vmem:[#allocation4 + $0x50] sm:$0xff] %v519_v48  ;;  %v448_v51 = vadd.f32 %v447_v49, %v1620_v59  ;;  %v521_v52 = vadd.f32 %v520_v50, %v1622_v60 }
 0x105   : > { %v449_v53 = vpop.f32.mrf.mxu0  ;;  %v522_v54 = vpop.f32.mrf.mxu1 }
 0x106   : > { %556 = vst [vmem:[#allocation4 + $0x48] sm:$0xff] %v448_v51  ;;  %558 = vst [vmem:[#allocation4 + $0x58] sm:$0xff] %v521_v52  ;;  %v450_v55 = vadd.f32 %v449_v53, %v1616_v57  ;;  %v523_v56 = vadd.f32 %v522_v54, %v1618_v58 }
 0x107   : > { %v451_v61 = vpop.f32.mrf.mxu0  ;;  %v524_v62 = vpop.f32.mrf.mxu1 }
 0x108   : > { %559 = vst [vmem:[#allocation4 + $0x60] sm:$0xff] %v450_v55  ;;  %561 = vst [vmem:[#allocation4 + $0x70] sm:$0xff] %v523_v56  ;;  %v452_v63 = vadd.f32 %v451_v61, %v1620_v59  ;;  %v525_v0 = vadd.f32 %v524_v62, %v1622_v60 }
 0x109   : > { %v455_v1 = vpop.f32.mrf.mxu0  ;;  %v528_v34 = vpop.f32.mrf.mxu1 }
 0x10a   : > { %560 = vst [vmem:[#allocation4 + $0x68] sm:$0xff] %v452_v63  ;;  %562 = vst [vmem:[#allocation4 + $0x78] sm:$0xff] %v525_v0  ;;  %v456_v35 = vadd.f32 %v455_v1, %v1616_v57  ;;  %v529_v36 = vadd.f32 %v528_v34, %v1618_v58 }
 0x10b   : > { %v457_v37 = vpop.f32.mrf.mxu0  ;;  %v530_v38 = vpop.f32.mrf.mxu1 }
 0x10c   : > { %563 = vst [vmem:[#allocation4 + $0x80] sm:$0xff] %v456_v35  ;;  %565 = vst [vmem:[#allocation4 + $0x90] sm:$0xff] %v529_v36  ;;  %v458_v39 = vadd.f32 %v457_v37, %v1620_v59  ;;  %v531_v40 = vadd.f32 %v530_v38, %v1622_v60 }
 0x10d   : > { %v459_v41 = vpop.f32.mrf.mxu0  ;;  %v532_v42 = vpop.f32.mrf.mxu1 }
 0x10e   : > { %564 = vst [vmem:[#allocation4 + $0x88] sm:$0xff] %v458_v39  ;;  %566 = vst [vmem:[#allocation4 + $0x98] sm:$0xff] %v531_v40  ;;  %v460_v43 = vadd.f32 %v459_v41, %v1616_v57  ;;  %v533_v44 = vadd.f32 %v532_v42, %v1618_v58 }
 0x10f   : > { %v461_v45 = vpop.f32.mrf.mxu0  ;;  %v534_v46 = vpop.f32.mrf.mxu1 }
 0x110   : > { %567 = vst [vmem:[#allocation4 + $0xa0] sm:$0xff] %v460_v43  ;;  %569 = vst [vmem:[#allocation4 + $0xb0] sm:$0xff] %v533_v44  ;;  %v462_v47 = vadd.f32 %v461_v45, %v1620_v59  ;;  %v535_v48 = vadd.f32 %v534_v46, %v1622_v60 }
 0x111   : > { %v465_v49 = vpop.f32.mrf.mxu0  ;;  %v538_v50 = vpop.f32.mrf.mxu1 }
 0x112   : > { %568 = vst [vmem:[#allocation4 + $0xa8] sm:$0xff] %v462_v47  ;;  %570 = vst [vmem:[#allocation4 + $0xb8] sm:$0xff] %v535_v48  ;;  %v466_v51 = vadd.f32 %v465_v49, %v1616_v57  ;;  %v539_v52 = vadd.f32 %v538_v50, %v1618_v58 }
 0x113   : > { %v467_v53 = vpop.f32.mrf.mxu0  ;;  %v540_v54 = vpop.f32.mrf.mxu1 }
 0x114   : > { %571 = vst [vmem:[#allocation4 + $0xc0] sm:$0xff] %v466_v51  ;;  %573 = vst [vmem:[#allocation4 + $0xd0] sm:$0xff] %v539_v52  ;;  %v468_v55 = vadd.f32 %v467_v53, %v1620_v59  ;;  %v541_v56 = vadd.f32 %v540_v54, %v1622_v60 }
 0x115   : > { %v469_v61 = vpop.f32.mrf.mxu0  ;;  %v542_v62 = vpop.f32.mrf.mxu1 }
 0x116   : > { %572 = vst [vmem:[#allocation4 + $0xc8] sm:$0xff] %v468_v55  ;;  %574 = vst [vmem:[#allocation4 + $0xd8] sm:$0xff] %v541_v56  ;;  %v470_v63 = vadd.f32 %v469_v61, %v1616_v57  ;;  %v543_v0 = vadd.f32 %v542_v62, %v1618_v58 }
 0x117   : > { %v471_v1 = vpop.f32.mrf.mxu0  ;;  %v544_v34 = vpop.f32.mrf.mxu1 }
 0x118   : > { %575 = vst [vmem:[#allocation4 + $0xe0] sm:$0xff] %v470_v63  ;;  %577 = vst [vmem:[#allocation4 + $0xf0] sm:$0xff] %v543_v0  ;;  %v472_v35 = vadd.f32 %v471_v1, %v1620_v59  ;;  %v545_v36 = vadd.f32 %v544_v34, %v1622_v60 }
 0x11a   : > { %576 = vst [vmem:[#allocation4 + $0xe8] sm:$0xff] %v472_v35  ;;  %578 = vst [vmem:[#allocation4 + $0xf8] sm:$0xff] %v545_v36 }
 0x11b LB: >> { %v1162_v57 = vcombine.high %v1563_v30, %v1569_v32  ;;  %v1161_v58 = vcombine.low %v1563_v30, %v1569_v32  ;;  %v1158_v59 = vcombine.high %v1548_v26, %v1554_v28  ;;  %v1164_v60 = vcombine.high %v1566_v31, %v1572_v33  ;;  %s1129_s25 = sshll.u32 %s1351_s21, 1  ;;  %s1351_s21 = sphi %s1660_s21, %s616_s21  }
 0x11c   : >> { %v1163_v37 = vcombine.low %v1566_v31, %v1572_v33  ;;  %v1160_v38 = vcombine.high %v1551_v27, %v1560_v29  ;;  %v1157_v39 = vcombine.low %v1548_v26, %v1554_v28  ;;  %v1154_v40 = vcombine.high %v1536_v22, %v1542_v24  ;;  %s618_s6 = ssub.s32 7, %s1129_s25 }
 0x11d   : >> { %793 = vmatprep.subr.bf16.mxu0 %v1162_v57  ;;  %834 = vmatprep.subr.bf16.mxu1 %v1164_v60  ;;  %v1159_v41 = vcombine.low %v1551_v27, %v1560_v29  ;;  %v1156_v42 = vcombine.high %v1539_v23, %v1545_v25  ;;  %v1358_v43 = vmov 0   ;;  %v1153_v44 = vcombine.low %v1536_v22, %v1542_v24  ;;  %v631_v57 = vld [vmem:[#allocation2] sm:$0xff]  ;;  %s619_s23 = smul.u32 %s1339_s18, %s618_s6 }
 0x11e   : >> { %794 = vmatpush1.bf16.msra.mxu0 %v1161_v58  ;;  %835 = vmatpush1.bf16.msra.mxu1 %v1163_v37  ;;  %v1150_v45 = vcombine.high %v1523_v18, %v1530_v20  ;;  %v1155_v46 = vcombine.low %v1539_v23, %v1545_v25  ;;  %v1152_v47 = vcombine.high %v1526_v19, %v1533_v21 }
 0x11f   : >> { %795 = vmatprep.subr.bf16.mxu0 %v1158_v59  ;;  %836 = vmatprep.subr.bf16.mxu1 %v1160_v38  ;;  %v1149_v48 = vcombine.low %v1523_v18, %v1530_v20  ;;  %v1146_v49 = vcombine.high %v1511_v14, %v1517_v16  ;;  %v1151_v50 = vcombine.low %v1526_v19, %v1533_v21  ;;  %s1732_s24 = sadd.s32 %s1351_s21, %s619_s23  ;;  %s616_s21 = sadd.s32 1, %s1351_s21  }
 0x120   : >> { %825 = vmatprep.mubr.bf16.mxu0 %v1358_v43  ;;  %866 = vmatprep.mubr.bf16.mxu1 %v1358_v43  ;;  %v1148_v51 = vcombine.high %v1514_v15, %v1520_v17  ;;  %v1145_v52 = vcombine.low %v1511_v14, %v1517_v16  ;;  %v1142_v53 = vcombine.high %v1499_v10, %v1505_v12  ;;  %s1130_s29 = sshll.u32 %s1732_s24, 3  ;;  %p613_p11 = scmp.ge.s32.totalorder %s616_s21, 8  }
 0x121   : >> { %v1147_v54 = vcombine.low %v1514_v15, %v1520_v17  ;;  %v1144_v55 = vcombine.high %v1502_v11, %v1508_v13  ;;  %v1141_v56 = vcombine.low %v1499_v10, %v1505_v12  ;;  %v1138_v61 = vcombine.high %v1484_v6, %v1493_v8  ;;  %s622_s30 = sshra.s32 %s1130_s29, 3  ;;  %s906_s8 = scalar_lea.vmem %s1658_s26, %s1130_s29 [#allocation7] }
 0x122   : >> { %796 = vmatpush1.bf16.msra.mxu0 %v1157_v39  ;;  %837 = vmatpush1.bf16.msra.mxu1 %v1159_v41  ;;  %v1143_v62 = vcombine.low %v1502_v11, %v1508_v13  ;;  %v1140_v63 = vcombine.high %v1487_v7, %v1496_v9  ;;  %v1137_v0 = vcombine.low %v1484_v6, %v1493_v8  ;;  %s1174_s5 = sshll.u32 %s622_s30, 5 }
 0x123   : >> { %797 = vmatprep.subr.bf16.mxu0 %v1154_v40  ;;  %838 = vmatprep.subr.bf16.mxu1 %v1156_v42  ;;  %v1134_v1 = vcombine.high %v1472_v2, %v1478_v4  ;;  %v1139_v34 = vcombine.low %v1487_v7, %v1496_v9  ;;  %v1136_v35 = vcombine.high %v1475_v3, %v1481_v5  ;;  %s626_s7 = scalar_lea.vmem [#allocation4], %s1174_s5 }
 0x124   : >> { %v1133_v36 = vcombine.low %v1472_v2, %v1478_v4  ;;  %v1135_v58 = vcombine.low %v1475_v3, %v1481_v5  ;;  %v632_v59 = vpack.c.bf16 %v631_v57, %v631_v57  ;;  %v627_v60 = vld [vmem:[%s626_s7] sm:$0xff]  ;;  %v628_v38 = vld [vmem:[%s626_s7 + $0x8] sm:$0xff] }
 0x126   : >> { %798 = vmatpush1.bf16.msra.mxu0 %v1153_v44  ;;  %839 = vmatpush1.bf16.msra.mxu1 %v1155_v46 }
 0x127   : >> { %799 = vmatprep.subr.bf16.mxu0 %v1150_v45  ;;  %840 = vmatprep.subr.bf16.mxu1 %v1152_v47 }
 0x12a   : >> { %800 = vmatpush1.bf16.msra.mxu0 %v1149_v48  ;;  %841 = vmatpush1.bf16.msra.mxu1 %v1151_v50  ;;  %v630_v50 = vld [vmem:[%s626_s7 + $0x18] sm:$0xff] }
 0x12b   : >> { %801 = vmatprep.subr.bf16.mxu0 %v1146_v49  ;;  %842 = vmatprep.subr.bf16.mxu1 %v1148_v51  ;;  %v629_v51 = vld [vmem:[%s626_s7 + $0x10] sm:$0xff] }
 0x12e   : >> { %802 = vmatpush1.bf16.msra.mxu0 %v1145_v52  ;;  %843 = vmatpush1.bf16.msra.mxu1 %v1147_v54 }
 0x12f   : >> { %803 = vmatprep.subr.bf16.mxu0 %v1142_v53  ;;  %844 = vmatprep.subr.bf16.mxu1 %v1144_v55 }
 0x132   : >> { %804 = vmatpush1.bf16.msra.mxu0 %v1141_v56  ;;  %845 = vmatpush1.bf16.msra.mxu1 %v1143_v62 }
 0x133   : >> { %805 = vmatprep.subr.bf16.mxu0 %v1138_v61  ;;  %846 = vmatprep.subr.bf16.mxu1 %v1140_v63 }
 0x136   : >> { %806 = vmatpush1.bf16.msra.mxu0 %v1137_v0  ;;  %847 = vmatpush1.bf16.msra.mxu1 %v1139_v34  ;;  %v898_v34 = vld [vmem:[#allocation3] sm:$0xff] }
 0x137   : >> { %807 = vmatprep.subr.bf16.mxu0 %v1134_v1  ;;  %848 = vmatprep.subr.bf16.mxu1 %v1136_v35 }
 0x13a   : >> { %808 = vmatpush1.bf16.msra.mxu0 %v1133_v36  ;;  %849 = vmatpush1.bf16.msra.mxu1 %v1135_v58 }
 0x13d   : >> { %826 = vmatmul.mubr.bf16.vlgmr.msra.gmra.mxu0 %v632_v59  ;;  %867 = vmatmul.mubr.bf16.vlgmr.msra.gmra.mxu1 %v632_v59 }
 0x1fd   : >> { %v827_v37 = vpop.f32.mrf.mxu0  ;;  %v868_v40 = vpop.f32.mrf.mxu1 }
 0x1fe   : >> { %v875_v39 = vadd.f32 %v827_v37, %v627_v60  ;;  %v877_v53 = vadd.f32 %v868_v40, %v629_v51 }
 0x1ff   : >> { %v829_v41 = vpop.f32.mrf.mxu0  ;;  %v870_v44 = vpop.f32.mrf.mxu1 }
 0x200   : >> { %v1165_v42 = vmul.f32 -1.442695, %v875_v39  ;;  %v876_v43 = vadd.f32 %v829_v41, %v628_v38  ;;  %v878_v52 = vadd.f32 %v870_v44, %v630_v50 }
 0x201   : >> { %v831_v45 = vpop.f32.mrf.mxu0  ;;  %v872_v47 = vpop.f32.mrf.mxu1 }
 0x202   : >> { %1249 = vpow2.f32 %v1165_v42  ;;  %v1166_v46 = vmul.f32 -1.442695, %v876_v43  ;;  %v1167_v54 = vmul.f32 -1.442695, %v878_v52 }
 0x203   : >> { %v832_v48 = vpop.f32.mrf.mxu0  ;;  %v873_v49 = vpop.f32.mrf.mxu1 }
 0x204   : >> { %1251 = vpow2.f32 %v1166_v46 }
 0x205   : >> { %1253 = vtanh.f32 %v877_v53 }
 0x206   : >> { %1255 = vpow2.f32 %v1167_v54 }
 0x20f   : >> { %v1250_v55 = vpop.eup %1249 }
 0x210   : >> { %v882_v56 = vadd.f32 1.0, %v1250_v55 }
 0x211   : >> { %v1252_v61 = vpop.eup %1251 }
 0x212   : >> { %1257 = vrcp.f32 %v882_v56  ;;  %v888_v62 = vadd.f32 1.0, %v1252_v61  ;;  %v1254_v63 = vpop.eup %1253 }
 0x213   : >> { %v1256_v0 = vpop.eup %1255 }
 0x214   : >> { %1259 = vrcp.f32 %v888_v62  ;;  %v895_v36 = vadd.f32 1.0, %v1256_v0 }
 0x216   : >> { %1261 = vrcp.f32 %v895_v36 }
 0x21f   : >> { %v1258_v1 = vpop.eup %1257 }
 0x220   : >> { %v900_v58 = vmul.f32 %v1258_v1, %v1254_v63 }
 0x221   : >> { %v1260_v35 = vpop.eup %1259 }
 0x222   : >> { %v899_v57 = vmul.f32 %v1260_v35, %v898_v34 }
 0x223   : >> { %v1262_v60 = vpop.eup %1261 }
 0x224   : >> { %v901_v59 = vadd.f32 %v900_v58, %v899_v57 }
 0x226   : >> { %1263 = vtanh.f32 %v901_v59  ;;  %904 = vst [vmem:[#allocation3] sm:$0xff] %v901_v59 }
 0x232   : > { %615 = sbr.rel (!%p613_p11) target bundleno = 283 (0x11b), region = 136 }
 0x233   : >> { %v1264_v37 = vpop.eup %1263 }
 0x234   : >> { %v903_v38 = vmul.f32 %v1264_v37, %v1262_v60 }
 0x236   : >> { %905 = vst [vmem:[#allocation2] sm:$0xff] %v903_v38  ;;  %907 = vst [vmem:[%s906_s8] sm:$0xff] %v903_v38 }
 0x237   : > { %914 = sbr.rel (!%p1434_p9) target bundleno = 579 (0x243), region = 55  ;;  %s1169_s9 = sshll.u32 (%p1434_p9), %s1339_s18, 3 }
 0x238   : > { %s922_s12 = scalar_lea.vmem (%p1434_p9), %s1779_s4, %s1169_s9 }
 0x23d   : > { %v965_v39 = vld [vmem:[%s1658_s26] sm:$0xff]  ;;  %v967_v40 = vld [vmem:[%s1658_s26 + $0x8] sm:$0xff]  ;;  %v969_v41 = vld [vmem:[%s1658_s26 + $0x10] sm:$0xff] }
 0x23e   : > { %v971_v2 = vld [vmem:[%s1658_s26 + $0x18] sm:$0xff]  ;;  %v973_v3 = vld [vmem:[%s1658_s26 + $0x20] sm:$0xff]  ;;  %v975_v4 = vld [vmem:[%s1658_s26 + $0x28] sm:$0xff]  ;;  %966 = vst [vmem:[%s922_s12] sm:$0xff] %v965_v39 }
 0x23f   : > { %968 = vst [vmem:[%s922_s12 + $0x10] sm:$0xff] %v967_v40  ;;  %970 = vst [vmem:[%s922_s12 + $0x20] sm:$0xff] %v969_v41  ;;  %v977_v5 = vld [vmem:[%s1658_s26 + $0x30] sm:$0xff]  ;;  %v979_v6 = vld [vmem:[%s1658_s26 + $0x38] sm:$0xff] }
 0x240   : > { %972 = vst [vmem:[%s922_s12 + $0x30] sm:$0xff] %v971_v2  ;;  %974 = vst [vmem:[%s922_s12 + $0x40] sm:$0xff] %v973_v3 }
 0x241   : > { %976 = vst [vmem:[%s922_s12 + $0x50] sm:$0xff] %v975_v4  ;;  %978 = vst [vmem:[%s922_s12 + $0x60] sm:$0xff] %v977_v5 }
 0x242   : > { %980 = vst [vmem:[%s922_s12 + $0x70] sm:$0xff] %v979_v6 }
 0x243 PF: > { %s17_s20 = sadd.s32 1, %s1347_s20   ;;  %s1784_s15 = smov %s1331_s16 }
 0x244   : > { %p14_p9 = scmp.ge.s32.totalorder %s17_s20, 4   ;;  %s1785_s16 = smov %s1335_s17 }
 0x245   : > { %s1786_s17 = smov %s1432_s27  ;;  %s1787_s18 = smov %s1343_s19 }
 0x246   : > { %s1788_s19 = smov %s1790_s22  ;;  %16 = sbr.rel (!%p14_p9) target bundleno = 4 (0x4), region = 147 }
 0x24b   :  { %996 = vsyncpa [#allocation6], 1 }
 0x24c   :  { %998 = vsyncpa [#allocation6 + $0x1], 1 }

// kernel: neural_encoder_forward.4
= control target key start
LH: loop header
LB: loop body
LE: loop exit
PB: predicated region body
PF: predicated region fallthrough
CT: control target
= control target key end

     0   :  { %10 = vsyncpa [#allocation6], 0  ;;  %s2449_s0 = inlined_call_operand.vmem [shape: f32[1,64,256], index: 0, kind: input, shape index: {}]   ;;  %s2450_s1 = inlined_call_operand.vmem [shape: f32[1,64,1], index: 1, kind: input, shape index: {}]   ;;  %s2451_s2 = inlined_call_operand.vmem [shape: bf16[2,256,512], index: 2, kind: input, shape index: {}]   ;;  %s2452_s3 = inlined_call_operand.hbm [shape: bf16[2,128,512], index: 3, kind: input, shape index: {}]   ;;  %s2453_s4 = inlined_call_operand.hbm [shape: f32[2,1,512], index: 4, kind: input, shape index: {}]   ;;  %s2454_s5 = inlined_call_operand.vmem [shape: f32[8,256], index: 5, kind: output, shape index: {}]  }
   0x1   :  { %12 = vsyncpa [#allocation6 + $0x1], 0 }
   0x2   :  { %13 = vsyncpa [#allocation8], 0 }
   0x3   :  { %15 = vsyncpa [#allocation8 + $0x1], 0  ;;  %s1973_s18 = smov 0   ;;  %s1975_s19 = smov 0  }
   0x4   :  { %s1977_s20 = smov 0   ;;  %s1979_s21 = smov 0  }
   0x5   :  { %s1981_s22 = smov 0   ;;  %s1983_s23 = smov 0  }
   0x6 LB: > { %s1505_s24 = sadd.s32 4294967295, %s1931_s23   ;;  %s33_s25 = sadd.s32 1, %s1927_s22  ;;  %s1931_s23 = sphi %s1983_s23, %s21_s23   ;;  %s1927_s22 = sphi %s1981_s22, %s2463_s22   ;;  %s1923_s21 = sphi %s1979_s21, %s2462_s21   ;;  %s1919_s20 = sphi %s1977_s20, %s2461_s20   ;;  %s1915_s19 = sphi %s1975_s19, %s2460_s19   ;;  %s1911_s18 = sphi %s1973_s18, %s2459_s18  }
   0x7   : > { %p35_p0 = scmp.ge.s32.totalorder %s33_s25, 2  ;;  %s134_s26 = sadd.s32 1, %s1919_s20 }
   0x8   : > { %p141_p1 = scmp.ne.s32.totalorder %s1919_s20, %s1915_s19  ;;  %p142_p2 = scmp.eq.s32.totalorder %s1931_s23, 0 }
   0x9   : > { %s2465_s25 = smov (%p35_p0, %s33_s25), 0  ;;  %p147_p4 = scmp.ne.s32.totalorder %s1915_s19, %s1911_s18 }
   0xa   : > { %p2009_p3 = por %p142_p2, %p141_p1  ;;  %s131_s28 = ssub.s32 %s1927_s22, %s2465_s25 }
   0xb   : > { %p148_p5 = scmp.eq.s32.totalorder %s1505_s24, 0  ;;  %p132_p6 = scmp.eq.s32.totalorder %s131_s28, 0 }
   0xc   : > { %p1643_p8 = scmp.lt.s32.totalorder %s1931_s23, 2  ;;  %s2025_s6 = sand.u32 1, %s1919_s20  }
   0xd   : > { %p2016_p7 = por %p148_p5, %p147_p4  ;;  %s1628_s7 = sshll.u32 %s1927_s22, 12 }
   0xe   : > { %s2022_s30 = scalar_select %p132_p6, %s1919_s20, %s134_s26  }
   0xf   : > { %s1511_s8 = sshll.u32 %s2025_s6, 8  ;;  %s273_s11 = scalar_lea.hbm %s2452_s3, %s1628_s7 }
  0x10   : > { %s267_s12 = scalar_lea.vmem [#allocation5], %s1511_s8  ;;  %p2034_p9 = pnand %p1643_p8, %p2009_p3 }
  0x11   : > { %s274_s13 = sshll.u32 %s267_s12, 4  ;;  %s264_s15 = scalar_lea.sflag [#allocation6], %s2025_s6  ;;  %s275_s13 = int_to_ptr.vmem [resolvable:$true] %s274_s13 }
  0x12   : > { %p1819_p10 = pneg %p2034_p9  ;;  %s1830_s16 = scalar_lea.vmem %s275_s13, 4096 }
  0x13   : > { %p1831_p11 = scmp.ne.s32.totalorder %s275_s13, %s1830_s16  ;;  %s1937_s17 = smov [#allocation5]  }
  0x14   : > { %s1835_s18 = sshll.u32 %s1937_s17, 4  ;;  %s1836_s18 = int_to_ptr.vmem [resolvable:$false] %s1835_s18 }
  0x15   : > { %p1833_p12 = pnand %p1831_p11, %p1819_p10  ;;  %s1837_s24 = scalar_lea.vmem %s1836_s18, 8192 }
  0x16   : > { %p1838_p0 = scmp.lt.s32.totalorder %s275_s13, %s1836_s18  ;;  %p1839_p1 = scmp.lt.s32.totalorder %s1837_s24, %s1830_s16 }
  0x17   : > { %p1834_p13 = pneg %p1833_p12 }
  0x18   : > { %p1840_p2 = por %p1839_p1, %p1838_p0 }
  0x1a   : > { %p1841_p3 = pnand %p1840_p2, %p1834_p13 }
  0x1c   : > { %1844 = shalt.err (!%p1841_p3)
}
  0x1d   : > { %s1938_s26 = smov 256   ;;  %s1939_s27 = smov 16  }
  0x1e   : > { %1639 = dma.hbm_to_vmem [thread:$0]  (!%p2034_p9), %s273_s11, 4096, %s275_s13, %s264_s15, %s1938_s26, %s1938_s26, %s1939_s27  }
  0x1f   : > { %p1517_p4 = scmp.ge.s32.totalorder %s1931_s23, 1  ;;  %p301_p5 = scmp.lt.s32.totalorder %s1931_s23, 3 }
  0x20   : > { %s1514_s28 = sshll.u32 %s2025_s6, 2  ;;  %s1629_s8 = sshll.u32 %s1927_s22, 6 }
  0x21   : > { %p2049_p6 = pnand %p1517_p4, %p301_p5  ;;  %s288_s9 = scalar_lea.vmem [#allocation7], %s1514_s28 }
  0x22   : > { %s296_s10 = sshll.u32 %s288_s9, 4  ;;  %s294_s17 = scalar_lea.hbm %s2453_s4, %s1629_s8  ;;  %s297_s10 = int_to_ptr.vmem [resolvable:$true] %s296_s10 }
  0x23   : > { %s285_s18 = scalar_lea.sflag [#allocation8], %s2025_s6  ;;  %s1858_s24 = scalar_lea.vmem %s297_s10, 64 }
  0x24   : > { %p1859_p8 = scmp.ne.s32.totalorder %s297_s10, %s1858_s24  ;;  %s1940_s11 = smov [#allocation7]  }
  0x25   : > { %s1863_s13 = sshll.u32 %s1940_s11, 4  ;;  %s1864_s13 = int_to_ptr.vmem [resolvable:$false] %s1863_s13 }
  0x26   : > { %p1861_p11 = pnand %p1859_p8, %p1819_p10  ;;  %s1865_s15 = scalar_lea.vmem %s1864_s13, 128 }
  0x27   : > { %p1866_p13 = scmp.lt.s32.totalorder %s297_s10, %s1864_s13  ;;  %p1867_p0 = scmp.lt.s32.totalorder %s1865_s15, %s1858_s24 }
  0x28   : > { %p1862_p12 = pneg %p1861_p11 }
  0x29   : > { %p1868_p1 = por %p1867_p0, %p1866_p13 }
  0x2b   : > { %p1869_p2 = pnand %p1868_p1, %p1862_p12 }
  0x2d   : > { %1872 = shalt.err (!%p1869_p2)
}
  0x2e   : > { %1642 = dma.hbm_to_vmem [thread:$0]  (!%p2034_p9), %s294_s17, 64, %s297_s10, %s285_s18  }
  0x2f   : > { %305 = sbr.rel (%p2049_p6) target bundleno = 649 (0x289), region = 40  ;;  %s307_s6 = sand.u32 (!%p2049_p6), 1, %s1915_s19  }
  0x30   : > { %s1518_s26 = sshll.u32 (!%p2049_p6), %s307_s6, 8  ;;  %s308_s27 = scalar_lea.sflag (!%p2049_p6), [#allocation6], %s307_s6 }
  0x31   : > { %s2066_s28 = scalar_lea.vmem (!%p2049_p6), [#allocation5], %s1518_s26 }
  0x34   : > { %1902 = dma.done.wait (%p2016_p7), %s308_s27, 4096  }
  0x35   : > { %1904 = vsyncadd (%p2016_p7), %s308_s27, 4294963200  ;;  %s1519_s8 = sshll.u32 %s307_s6, 2  ;;  %s317_s9 = scalar_lea.sflag [#allocation8], %s307_s6 }
  0x36   : > { %s2072_s14 = scalar_lea.vmem [#allocation7], %s1519_s8 }
  0x37   : > { %1906 = dma.done.wait (%p2016_p7), %s317_s9, 64  }
  0x38   : > { %1908 = vsyncadd (%p2016_p7), %s317_s9, 4294967232  ;;  %p400_p9 = scmp.lt.s32.totalorder %s1923_s21, 1  ;;  %v1941_v0 = vmov 0.0   ;;  %v2090_v1 = vld [vmem:[%s2066_s28] sm:$0xff]  ;;  %v2093_v2 = vld [vmem:[%s2066_s28 + $0x8] sm:$0xff] }
  0x39   : > { %415 = vst [vmem:[#allocation2] sm:$0xff] %v1941_v0  ;;  %416 = vst [vmem:[#allocation3] sm:$0xff] %v1941_v0  ;;  %v2096_v3 = vld [vmem:[%s2066_s28 + $0x10] sm:$0xff]  ;;  %v2099_v4 = vld [vmem:[%s2066_s28 + $0x18] sm:$0xff] }
  0x3a   : > { %s2080_s29 = scalar_select %p400_p9, %s1923_s21, 1  ;;  %v2102_v5 = vld [vmem:[%s2066_s28 + $0x20] sm:$0xff]  ;;  %v2105_v6 = vld [vmem:[%s2066_s28 + $0x28] sm:$0xff]  ;;  %v2108_v7 = vld [vmem:[%s2066_s28 + $0x30] sm:$0xff] }
  0x3b   : > { %v2111_v8 = vld [vmem:[%s2066_s28 + $0x38] sm:$0xff]  ;;  %v2114_v9 = vld [vmem:[%s2066_s28 + $0x40] sm:$0xff]  ;;  %v2117_v10 = vld [vmem:[%s2066_s28 + $0x48] sm:$0xff] }
  0x3c   : > { %s1522_s7 = sshll.u32 %s2080_s29, 3  ;;  %v2120_v11 = vld [vmem:[%s2066_s28 + $0x50] sm:$0xff]  ;;  %v2123_v12 = vld [vmem:[%s2066_s28 + $0x58] sm:$0xff]  ;;  %v2126_v13 = vld [vmem:[%s2066_s28 + $0x60] sm:$0xff]  ;;  %s1630_s17 = sshll.u32 %s2080_s29, 9 }
  0x3d   : > { %s2086_s16 = scalar_lea.vmem %s2454_s5, %s1522_s7  ;;  %v2129_v14 = vld [vmem:[%s2066_s28 + $0x68] sm:$0xff]  ;;  %v2132_v15 = vld [vmem:[%s2066_s28 + $0x70] sm:$0xff]  ;;  %v2135_v16 = vld [vmem:[%s2066_s28 + $0x78] sm:$0xff]  ;;  %s2174_s11 = scalar_lea.vmem %s2451_s2, %s1630_s17 }
  0x3e   : > { %414 = vst [vmem:[%s2086_s16] sm:$0xff] %v1941_v0  ;;  %v2138_v17 = vld [vmem:[%s2066_s28 + $0x80] sm:$0xff]  ;;  %v2141_v18 = vld [vmem:[%s2066_s28 + $0x88] sm:$0xff]  ;;  %v2145_v19 = vld [vmem:[%s2066_s28 + $0x90] sm:$0xff] }
  0x3f   : > { %v2148_v20 = vld [vmem:[%s2066_s28 + $0x98] sm:$0xff]  ;;  %v2151_v21 = vld [vmem:[%s2066_s28 + $0xa0] sm:$0xff]  ;;  %v2154_v22 = vld [vmem:[%s2066_s28 + $0xa8] sm:$0xff] }
  0x40   : > { %v2157_v23 = vld [vmem:[%s2066_s28 + $0xb0] sm:$0xff]  ;;  %v2160_v24 = vld [vmem:[%s2066_s28 + $0xb8] sm:$0xff]  ;;  %v2163_v25 = vld [vmem:[%s2066_s28 + $0xc0] sm:$0xff] }
  0x41   : > { %v2166_v26 = vld [vmem:[%s2066_s28 + $0xc8] sm:$0xff]  ;;  %v2169_v27 = vld [vmem:[%s2066_s28 + $0xd0] sm:$0xff]  ;;  %v2177_v28 = vld [vmem:[%s2066_s28 + $0xd8] sm:$0xff] }
  0x42   : > { %v2180_v29 = vld [vmem:[%s2066_s28 + $0xe0] sm:$0xff]  ;;  %v2183_v30 = vld [vmem:[%s2066_s28 + $0xe8] sm:$0xff]  ;;  %v2186_v31 = vld [vmem:[%s2066_s28 + $0xf0] sm:$0xff] }
  0x43   : > { %v2189_v32 = vld [vmem:[%s2066_s28 + $0xf8] sm:$0xff]  ;;  %v1704_v33 = vld [vmem:[%s2174_s11 + $0xe4] ss:$16 sps:$4 sm:$0xff]   ;;  %v1708_v35 = vld [vmem:[%s2174_s11 + $0xe0] ss:$16 sps:$4 sm:$0xff]  }
  0x44   : > { %v1706_v34 = vld [vmem:[%s2174_s11 + $0xec] ss:$16 sps:$4 sm:$0xff]   ;;  %847 = vmatprep.subr.bf16.mxu0 %v1704_v33  ;;  %v1709_v36 = vld [vmem:[%s2174_s11 + $0xe8] ss:$16 sps:$4 sm:$0xff]   ;;  %v1710_v37 = vld [vmem:[%s2174_s11 + $0xc4] ss:$16 sps:$4 sm:$0xff]  }
  0x45   : > { %920 = vmatprep.subr.bf16.mxu1 %v1706_v34  ;;  %848 = vmatpush1.bf16.msra.mxu0 %v1708_v35  ;;  %v1712_v38 = vld [vmem:[%s2174_s11 + $0xcc] ss:$16 sps:$4 sm:$0xff]   ;;  %v1714_v39 = vld [vmem:[%s2174_s11 + $0xc0] ss:$16 sps:$4 sm:$0xff]   ;;  %v1715_v40 = vld [vmem:[%s2174_s11 + $0xc8] ss:$16 sps:$4 sm:$0xff]  }
  0x46   : > { %921 = vmatpush1.bf16.msra.mxu1 %v1709_v36  ;;  %849 = vmatprep.subr.bf16.mxu0 %v1710_v37  ;;  %v1716_v41 = vld [vmem:[%s2174_s11 + $0xa4] ss:$16 sps:$4 sm:$0xff]   ;;  %v1718_v42 = vld [vmem:[%s2174_s11 + $0xac] ss:$16 sps:$4 sm:$0xff]   ;;  %v1720_v43 = vld [vmem:[%s2174_s11 + $0xa0] ss:$16 sps:$4 sm:$0xff]  }
  0x47   : > { %922 = vmatprep.subr.bf16.mxu1 %v1712_v38  ;;  %v1721_v44 = vld [vmem:[%s2174_s11 + $0xa8] ss:$16 sps:$4 sm:$0xff]   ;;  %v1722_v45 = vld [vmem:[%s2174_s11 + $0x84] ss:$16 sps:$4 sm:$0xff]   ;;  %v1724_v46 = vld [vmem:[%s2174_s11 + $0x8c] ss:$16 sps:$4 sm:$0xff]  }
  0x48   : > { %v1726_v47 = vld [vmem:[%s2174_s11 + $0x80] ss:$16 sps:$4 sm:$0xff]   ;;  %v1727_v48 = vld [vmem:[%s2174_s11 + $0x88] ss:$16 sps:$4 sm:$0xff]   ;;  %v1728_v49 = vld [vmem:[%s2174_s11 + $0x64] ss:$16 sps:$4 sm:$0xff]  }
  0x49   : > { %850 = vmatpush1.bf16.msra.mxu0 %v1714_v39  ;;  %v1730_v50 = vld [vmem:[%s2174_s11 + $0x6c] ss:$16 sps:$4 sm:$0xff]   ;;  %v1732_v51 = vld [vmem:[%s2174_s11 + $0x60] ss:$16 sps:$4 sm:$0xff]   ;;  %v1733_v52 = vld [vmem:[%s2174_s11 + $0x68] ss:$16 sps:$4 sm:$0xff]  }
  0x4a   : > { %923 = vmatpush1.bf16.msra.mxu1 %v1715_v40  ;;  %851 = vmatprep.subr.bf16.mxu0 %v1716_v41  ;;  %v1734_v53 = vld [vmem:[%s2174_s11 + $0x44] ss:$16 sps:$4 sm:$0xff]   ;;  %v1736_v54 = vld [vmem:[%s2174_s11 + $0x4c] ss:$16 sps:$4 sm:$0xff]   ;;  %v1738_v55 = vld [vmem:[%s2174_s11 + $0x40] ss:$16 sps:$4 sm:$0xff]  }
  0x4b   : > { %924 = vmatprep.subr.bf16.mxu1 %v1718_v42  ;;  %v1739_v56 = vld [vmem:[%s2174_s11 + $0x48] ss:$16 sps:$4 sm:$0xff]   ;;  %v1740_v57 = vld [vmem:[%s2174_s11 + $0x24] ss:$16 sps:$4 sm:$0xff]   ;;  %v1742_v58 = vld [vmem:[%s2174_s11 + $0x2c] ss:$16 sps:$4 sm:$0xff]  }
  0x4c   : > { %v1744_v59 = vld [vmem:[%s2174_s11 + $0x20] ss:$16 sps:$4 sm:$0xff]   ;;  %v1745_v60 = vld [vmem:[%s2174_s11 + $0x28] ss:$16 sps:$4 sm:$0xff]   ;;  %v1746_v61 = vld [vmem:[%s2174_s11 + $0x4] ss:$16 sps:$4 sm:$0xff]  }
  0x4d   : > { %852 = vmatpush1.bf16.msra.mxu0 %v1720_v43  ;;  %v1748_v62 = vld [vmem:[%s2174_s11 + $0xc] ss:$16 sps:$4 sm:$0xff]   ;;  %v1750_v63 = vld [vmem:[%s2174_s11] ss:$16 sps:$4 sm:$0xff]   ;;  %v1751_v0 = vld [vmem:[%s2174_s11 + $0x8] ss:$16 sps:$4 sm:$0xff]  }
  0x4e   : > { %925 = vmatpush1.bf16.msra.mxu1 %v1721_v44  ;;  %853 = vmatprep.subr.bf16.mxu0 %v1722_v45  ;;  %v1752_v33 = vld [vmem:[%s2174_s11 + $0x1e4] ss:$16 sps:$4 sm:$0xff]   ;;  %v1754_v34 = vld [vmem:[%s2174_s11 + $0x1ec] ss:$16 sps:$4 sm:$0xff]   ;;  %v1756_v35 = vld [vmem:[%s2174_s11 + $0x1e0] ss:$16 sps:$4 sm:$0xff]  }
  0x4f   : > { %926 = vmatprep.subr.bf16.mxu1 %v1724_v46  ;;  %v1757_v36 = vld [vmem:[%s2174_s11 + $0x1e8] ss:$16 sps:$4 sm:$0xff]   ;;  %v1758_v37 = vld [vmem:[%s2174_s11 + $0x1c4] ss:$16 sps:$4 sm:$0xff]   ;;  %v1760_v38 = vld [vmem:[%s2174_s11 + $0x1cc] ss:$16 sps:$4 sm:$0xff]  }
  0x50   : > { %v1762_v39 = vld [vmem:[%s2174_s11 + $0x1c0] ss:$16 sps:$4 sm:$0xff]   ;;  %v1763_v40 = vld [vmem:[%s2174_s11 + $0x1c8] ss:$16 sps:$4 sm:$0xff]   ;;  %v1764_v41 = vld [vmem:[%s2174_s11 + $0x1a4] ss:$16 sps:$4 sm:$0xff]  }
  0x51   : > { %854 = vmatpush1.bf16.msra.mxu0 %v1726_v47  ;;  %v1766_v42 = vld [vmem:[%s2174_s11 + $0x1ac] ss:$16 sps:$4 sm:$0xff]   ;;  %v1768_v43 = vld [vmem:[%s2174_s11 + $0x1a0] ss:$16 sps:$4 sm:$0xff]   ;;  %v1769_v44 = vld [vmem:[%s2174_s11 + $0x1a8] ss:$16 sps:$4 sm:$0xff]  }
  0x52   : > { %927 = vmatpush1.bf16.msra.mxu1 %v1727_v48  ;;  %855 = vmatprep.subr.bf16.mxu0 %v1728_v49  ;;  %v1770_v45 = vld [vmem:[%s2174_s11 + $0x184] ss:$16 sps:$4 sm:$0xff]   ;;  %v1772_v46 = vld [vmem:[%s2174_s11 + $0x18c] ss:$16 sps:$4 sm:$0xff]   ;;  %v1774_v49 = vld [vmem:[%s2174_s11 + $0x180] ss:$16 sps:$4 sm:$0xff]  }
  0x53   : > { %928 = vmatprep.subr.bf16.mxu1 %v1730_v50  ;;  %v418_v47 = vld [vmem:[%s2449_s0 + $0x8] sm:$0xff]  ;;  %v420_v48 = vld [vmem:[%s2449_s0 + $0x18] sm:$0xff] }
  0x54   : > { %v434_v50 = vpack.c.bf16 %v420_v48, %v418_v47  ;;  %v425_v48 = vld [vmem:[%s2449_s0 + $0x40] sm:$0xff] }
  0x55   : > { %856 = vmatpush1.bf16.msra.mxu0 %v1732_v51  ;;  %v1775_v51 = vld [vmem:[%s2174_s11 + $0x188] ss:$16 sps:$4 sm:$0xff]  }
  0x56   : > { %929 = vmatpush1.bf16.msra.mxu1 %v1733_v52  ;;  %857 = vmatprep.subr.bf16.mxu0 %v1734_v53  ;;  %v1776_v52 = vld [vmem:[%s2174_s11 + $0x164] ss:$16 sps:$4 sm:$0xff]   ;;  %v1778_v53 = vld [vmem:[%s2174_s11 + $0x16c] ss:$16 sps:$4 sm:$0xff]  }
  0x57   : > { %930 = vmatprep.subr.bf16.mxu1 %v1736_v54  ;;  %879 = vmatprep.mubr.bf16.mxu0 %v434_v50  ;;  %v1780_v54 = vld [vmem:[%s2174_s11 + $0x160] ss:$16 sps:$4 sm:$0xff]  }
  0x58   : > { %952 = vmatprep.mubr.bf16.mxu1 %v434_v50  ;;  %v430_v50 = vld [vmem:[%s2449_s0 + $0x68] sm:$0xff] }
  0x59   : > { %858 = vmatpush1.bf16.msra.mxu0 %v1738_v55  ;;  %v1781_v55 = vld [vmem:[%s2174_s11 + $0x168] ss:$16 sps:$4 sm:$0xff]  }
  0x5a   : > { %931 = vmatpush1.bf16.msra.mxu1 %v1739_v56  ;;  %859 = vmatprep.subr.bf16.mxu0 %v1740_v57  ;;  %v1782_v56 = vld [vmem:[%s2174_s11 + $0x144] ss:$16 sps:$4 sm:$0xff]   ;;  %v1784_v57 = vld [vmem:[%s2174_s11 + $0x14c] ss:$16 sps:$4 sm:$0xff]  }
  0x5b   : > { %932 = vmatprep.subr.bf16.mxu1 %v1742_v58  ;;  %v1786_v58 = vld [vmem:[%s2174_s11 + $0x140] ss:$16 sps:$4 sm:$0xff]  }
  0x5d   : > { %860 = vmatpush1.bf16.msra.mxu0 %v1744_v59  ;;  %v1787_v59 = vld [vmem:[%s2174_s11 + $0x148] ss:$16 sps:$4 sm:$0xff]  }
  0x5e   : > { %933 = vmatpush1.bf16.msra.mxu1 %v1745_v60  ;;  %861 = vmatprep.subr.bf16.mxu0 %v1746_v61  ;;  %v1788_v60 = vld [vmem:[%s2174_s11 + $0x124] ss:$16 sps:$4 sm:$0xff]   ;;  %v1790_v61 = vld [vmem:[%s2174_s11 + $0x12c] ss:$16 sps:$4 sm:$0xff]  }
  0x5f   : > { %934 = vmatprep.subr.bf16.mxu1 %v1748_v62  ;;  %v1792_v62 = vld [vmem:[%s2174_s11 + $0x120] ss:$16 sps:$4 sm:$0xff]  }
  0x61   : > { %862 = vmatpush1.bf16.msra.mxu0 %v1750_v63  ;;  %v1793_v63 = vld [vmem:[%s2174_s11 + $0x128] ss:$16 sps:$4 sm:$0xff]  }
  0x62   : > { %935 = vmatpush1.bf16.msra.mxu1 %v1751_v0  ;;  %863 = vmatprep.subr.bf16.mxu0 %v1752_v33  ;;  %v1794_v0 = vld [vmem:[%s2174_s11 + $0x104] ss:$16 sps:$4 sm:$0xff]   ;;  %v1796_v33 = vld [vmem:[%s2174_s11 + $0x10c] ss:$16 sps:$4 sm:$0xff]  }
  0x63   : > { %936 = vmatprep.subr.bf16.mxu1 %v1754_v34  ;;  %v1798_v34 = vld [vmem:[%s2174_s11 + $0x100] ss:$16 sps:$4 sm:$0xff]  }
  0x65   : > { %864 = vmatpush2.bf16.msra.mxu0 %v1756_v35  ;;  %v417_v35 = vld [vmem:[%s2449_s0] sm:$0xff] }
  0x66   : > { %937 = vmatpush2.bf16.msra.mxu1 %v1757_v36  ;;  %865 = vmatprep.subr.bf16.mxu0 %v1758_v37  ;;  %v419_v36 = vld [vmem:[%s2449_s0 + $0x10] sm:$0xff]  ;;  %v1799_v37 = vld [vmem:[%s2174_s11 + $0x108] ss:$16 sps:$4 sm:$0xff]  }
  0x67   : > { %938 = vmatprep.subr.bf16.mxu1 %v1760_v38  ;;  %v422_v38 = vld [vmem:[%s2449_s0 + $0x28] sm:$0xff] }
  0x69   : > { %866 = vmatpush2.bf16.msra.mxu0 %v1762_v39  ;;  %v424_v39 = vld [vmem:[%s2449_s0 + $0x38] sm:$0xff] }
  0x6a   : > { %939 = vmatpush2.bf16.msra.mxu1 %v1763_v40  ;;  %867 = vmatprep.subr.bf16.mxu0 %v1764_v41  ;;  %v433_v40 = vpack.c.bf16 %v419_v36, %v417_v35  ;;  %v436_v41 = vpack.c.bf16 %v424_v39, %v422_v38 }
  0x6b   : > { %940 = vmatprep.subr.bf16.mxu1 %v1766_v42  ;;  %v421_v42 = vld [vmem:[%s2449_s0 + $0x20] sm:$0xff] }
  0x6d   : > { %868 = vmatpush2.bf16.msra.mxu0 %v1768_v43  ;;  %v423_v43 = vld [vmem:[%s2449_s0 + $0x30] sm:$0xff] }
  0x6e   : > { %941 = vmatpush2.bf16.msra.mxu1 %v1769_v44  ;;  %869 = vmatprep.subr.bf16.mxu0 %v1770_v45  ;;  %v426_v44 = vld [vmem:[%s2449_s0 + $0x48] sm:$0xff]  ;;  %v428_v45 = vld [vmem:[%s2449_s0 + $0x58] sm:$0xff] }
  0x6f   : > { %942 = vmatprep.subr.bf16.mxu1 %v1772_v46  ;;  %v435_v46 = vpack.c.bf16 %v423_v43, %v421_v42  ;;  %v438_v47 = vpack.c.bf16 %v428_v45, %v426_v44 }
  0x71   : > { %870 = vmatpush2.bf16.msra.mxu0 %v1774_v49  ;;  %v427_v49 = vld [vmem:[%s2449_s0 + $0x50] sm:$0xff] }
  0x72   : > { %943 = vmatpush2.bf16.msra.mxu1 %v1775_v51  ;;  %871 = vmatprep.subr.bf16.mxu0 %v1776_v52  ;;  %v432_v51 = vld [vmem:[%s2449_s0 + $0x78] sm:$0xff]  ;;  %v437_v52 = vpack.c.bf16 %v427_v49, %v425_v48 }
  0x73   : > { %944 = vmatprep.subr.bf16.mxu1 %v1778_v53  ;;  %v440_v53 = vpack.c.bf16 %v432_v51, %v430_v50 }
  0x75   : > { %872 = vmatpush2.bf16.msra.mxu0 %v1780_v54  ;;  %v429_v54 = vld [vmem:[%s2449_s0 + $0x60] sm:$0xff] }
  0x76   : > { %945 = vmatpush2.bf16.msra.mxu1 %v1781_v55  ;;  %873 = vmatprep.subr.bf16.mxu0 %v1782_v56  ;;  %v431_v55 = vld [vmem:[%s2449_s0 + $0x70] sm:$0xff] }
  0x77   : > { %946 = vmatprep.subr.bf16.mxu1 %v1784_v57  ;;  %v439_v56 = vpack.c.bf16 %v431_v55, %v429_v54  ;;  %v507_v57 = vlaneseq }
  0x79   : > { %874 = vmatpush2.bf16.msra.mxu0 %v1786_v58  ;;  %v508_v58 = vshrl.u32 %v507_v57, 7 }
  0x7a   : > { %947 = vmatpush2.bf16.msra.mxu1 %v1787_v59  ;;  %875 = vmatprep.subr.bf16.mxu0 %v1788_v60  ;;  %v505_v60 = vld [vmem:[%s2072_s14] sm:$0xf]  ;;  %s2344_s14 = smov 0  }
  0x7b   : > { %948 = vmatprep.subr.bf16.mxu1 %v1790_v61  ;;  %v509_v59 = vsub.s32 0, %v508_v58  ;;  %v517_v61 = vsub.s32 2, %v508_v58 }
  0x7d   : > { %876 = vmatpush2.bf16.msra.mxu0 %v1792_v62  ;;  %v513_v62 = vsub.s32 1, %v508_v58 }
  0x7e   : > { %949 = vmatpush2.bf16.msra.mxu1 %v1793_v63  ;;  %877 = vmatprep.subr.bf16.mxu0 %v1794_v0  ;;  %v521_v63 = vsub.s32 3, %v508_v58  ;;  %v2304_v0 = vrot.slane %v505_v60, %v509_v59 }
  0x7f   : > { %950 = vmatprep.subr.bf16.mxu1 %v1796_v33  ;;  %v2306_v33 = vrot.slane %v505_v60, %v517_v61 }
  0x80   : > { %v2310_v36 = vrot.slane %v505_v60, %v521_v63 }
  0x81   : > { %878 = vmatpush2.bf16.msra.mxu0 %v1798_v34  ;;  %v2308_v34 = vrot.slane %v505_v60, %v513_v62 }
  0x82   : > { %951 = vmatpush2.bf16.msra.mxu1 %v1799_v37 }
  0x84   : > { %880 = vmatmul.mubr.bf16.vlgmr.msra.gmra.mxu0 %v433_v40 }
  0x85   : > { %953 = vmatmul.mubr.bf16.vlgmr.msra.gmra.mxu1 %v433_v40  ;;  %889 = vmatprep.mubr.bf16.mxu0 %v436_v41 }
  0x86   : > { %962 = vmatprep.mubr.bf16.mxu1 %v436_v41 }
  0x8c   : > { %890 = vmatmul.mubr.bf16.gmra.mxu0 %v435_v46 }
  0x8d   : > { %963 = vmatmul.mubr.bf16.gmra.mxu1 %v435_v46  ;;  %899 = vmatprep.mubr.bf16.mxu0 %v438_v47 }
  0x8e   : > { %972 = vmatprep.mubr.bf16.mxu1 %v438_v47 }
  0x94   : > { %900 = vmatmul.mubr.bf16.gmra.mxu0 %v437_v52 }
  0x95   : > { %973 = vmatmul.mubr.bf16.gmra.mxu1 %v437_v52  ;;  %909 = vmatprep.mubr.bf16.mxu0 %v440_v53 }
  0x96   : > { %982 = vmatprep.mubr.bf16.mxu1 %v440_v53 }
  0x9c   : > { %910 = vmatmul.mubr.bf16.gmra.mxu0 %v439_v56 }
  0x9d   : > { %983 = vmatmul.mubr.bf16.gmra.mxu1 %v439_v56 }
 0x144   : > { %v881_v35 = vpop.f32.mrf.mxu0 }
 0x145   : > { %v882_v37 = vadd.f32 %v881_v35, %v2304_v0  ;;  %v954_v38 = vpop.f32.mrf.mxu1 }
 0x146   : > { %v955_v39 = vadd.f32 %v954_v38, %v2306_v33  ;;  %v883_v40 = vpop.f32.mrf.mxu0 }
 0x147   : > { %993 = vst [vmem:[#allocation4] sm:$0xff] %v882_v37  ;;  %v884_v41 = vadd.f32 %v883_v40, %v2308_v34  ;;  %v956_v42 = vpop.f32.mrf.mxu1 }
 0x148   : > { %995 = vst [vmem:[#allocation4 + $0x10] sm:$0xff] %v955_v39  ;;  %v957_v43 = vadd.f32 %v956_v42, %v2310_v36  ;;  %v885_v44 = vpop.f32.mrf.mxu0 }
 0x149   : > { %994 = vst [vmem:[#allocation4 + $0x8] sm:$0xff] %v884_v41  ;;  %v886_v45 = vadd.f32 %v885_v44, %v2304_v0  ;;  %v958_v46 = vpop.f32.mrf.mxu1 }
 0x14a   : > { %996 = vst [vmem:[#allocation4 + $0x18] sm:$0xff] %v957_v43  ;;  %v959_v47 = vadd.f32 %v958_v46, %v2306_v33  ;;  %v887_v48 = vpop.f32.mrf.mxu0 }
 0x14b   : > { %997 = vst [vmem:[#allocation4 + $0x20] sm:$0xff] %v886_v45  ;;  %v888_v49 = vadd.f32 %v887_v48, %v2308_v34  ;;  %v960_v50 = vpop.f32.mrf.mxu1 }
 0x14c   : > { %999 = vst [vmem:[#allocation4 + $0x30] sm:$0xff] %v959_v47  ;;  %v961_v51 = vadd.f32 %v960_v50, %v2310_v36  ;;  %v891_v52 = vpop.f32.mrf.mxu0 }
 0x14d   : > { %998 = vst [vmem:[#allocation4 + $0x28] sm:$0xff] %v888_v49  ;;  %v892_v53 = vadd.f32 %v891_v52, %v2304_v0  ;;  %v964_v54 = vpop.f32.mrf.mxu1 }
 0x14e   : > { %1000 = vst [vmem:[#allocation4 + $0x38] sm:$0xff] %v961_v51  ;;  %v965_v55 = vadd.f32 %v964_v54, %v2306_v33  ;;  %v893_v56 = vpop.f32.mrf.mxu0 }
 0x14f   : > { %1001 = vst [vmem:[#allocation4 + $0x40] sm:$0xff] %v892_v53  ;;  %v894_v57 = vadd.f32 %v893_v56, %v2308_v34  ;;  %v966_v58 = vpop.f32.mrf.mxu1 }
 0x150   : > { %1003 = vst [vmem:[#allocation4 + $0x50] sm:$0xff] %v965_v55  ;;  %v967_v59 = vadd.f32 %v966_v58, %v2310_v36  ;;  %v895_v60 = vpop.f32.mrf.mxu0 }
 0x151   : > { %1002 = vst [vmem:[#allocation4 + $0x48] sm:$0xff] %v894_v57  ;;  %v896_v61 = vadd.f32 %v895_v60, %v2304_v0  ;;  %v968_v62 = vpop.f32.mrf.mxu1 }
 0x152   : > { %1004 = vst [vmem:[#allocation4 + $0x58] sm:$0xff] %v967_v59  ;;  %v969_v63 = vadd.f32 %v968_v62, %v2306_v33  ;;  %v897_v35 = vpop.f32.mrf.mxu0 }
 0x153   : > { %1005 = vst [vmem:[#allocation4 + $0x60] sm:$0xff] %v896_v61  ;;  %v898_v37 = vadd.f32 %v897_v35, %v2308_v34  ;;  %v970_v38 = vpop.f32.mrf.mxu1 }
 0x154   : > { %1007 = vst [vmem:[#allocation4 + $0x70] sm:$0xff] %v969_v63  ;;  %v971_v39 = vadd.f32 %v970_v38, %v2310_v36  ;;  %v901_v40 = vpop.f32.mrf.mxu0 }
 0x155   : > { %1006 = vst [vmem:[#allocation4 + $0x68] sm:$0xff] %v898_v37  ;;  %v902_v41 = vadd.f32 %v901_v40, %v2304_v0  ;;  %v974_v42 = vpop.f32.mrf.mxu1 }
 0x156   : > { %1008 = vst [vmem:[#allocation4 + $0x78] sm:$0xff] %v971_v39  ;;  %v975_v43 = vadd.f32 %v974_v42, %v2306_v33  ;;  %v903_v44 = vpop.f32.mrf.mxu0 }
 0x157   : > { %1009 = vst [vmem:[#allocation4 + $0x80] sm:$0xff] %v902_v41  ;;  %v904_v45 = vadd.f32 %v903_v44, %v2308_v34  ;;  %v976_v46 = vpop.f32.mrf.mxu1 }
 0x158   : > { %1011 = vst [vmem:[#allocation4 + $0x90] sm:$0xff] %v975_v43  ;;  %v977_v47 = vadd.f32 %v976_v46, %v2310_v36  ;;  %v905_v48 = vpop.f32.mrf.mxu0 }
 0x159   : > { %1010 = vst [vmem:[#allocation4 + $0x88] sm:$0xff] %v904_v45  ;;  %v906_v49 = vadd.f32 %v905_v48, %v2304_v0  ;;  %v978_v50 = vpop.f32.mrf.mxu1 }
 0x15a   : > { %1012 = vst [vmem:[#allocation4 + $0x98] sm:$0xff] %v977_v47  ;;  %v979_v51 = vadd.f32 %v978_v50, %v2306_v33  ;;  %v907_v52 = vpop.f32.mrf.mxu0 }
 0x15b   : > { %1013 = vst [vmem:[#allocation4 + $0xa0] sm:$0xff] %v906_v49  ;;  %v908_v53 = vadd.f32 %v907_v52, %v2308_v34  ;;  %v980_v54 = vpop.f32.mrf.mxu1 }
 0x15c   : > { %1015 = vst [vmem:[#allocation4 + $0xb0] sm:$0xff] %v979_v51  ;;  %v981_v55 = vadd.f32 %v980_v54, %v2310_v36  ;;  %v911_v56 = vpop.f32.mrf.mxu0 }
 0x15d   : > { %1014 = vst [vmem:[#allocation4 + $0xa8] sm:$0xff] %v908_v53  ;;  %v912_v57 = vadd.f32 %v911_v56, %v2304_v0  ;;  %v984_v58 = vpop.f32.mrf.mxu1 }
 0x15e   : > { %1016 = vst [vmem:[#allocation4 + $0xb8] sm:$0xff] %v981_v55  ;;  %v985_v59 = vadd.f32 %v984_v58, %v2306_v33  ;;  %v913_v60 = vpop.f32.mrf.mxu0 }
 0x15f   : > { %1017 = vst [vmem:[#allocation4 + $0xc0] sm:$0xff] %v912_v57  ;;  %v914_v61 = vadd.f32 %v913_v60, %v2308_v34  ;;  %v986_v62 = vpop.f32.mrf.mxu1 }
 0x160   : > { %1019 = vst [vmem:[#allocation4 + $0xd0] sm:$0xff] %v985_v59  ;;  %v987_v63 = vadd.f32 %v986_v62, %v2310_v36  ;;  %v915_v35 = vpop.f32.mrf.mxu0 }
 0x161   : > { %1018 = vst [vmem:[#allocation4 + $0xc8] sm:$0xff] %v914_v61  ;;  %v916_v37 = vadd.f32 %v915_v35, %v2304_v0  ;;  %v988_v38 = vpop.f32.mrf.mxu1 }
 0x162   : > { %1020 = vst [vmem:[#allocation4 + $0xd8] sm:$0xff] %v987_v63  ;;  %v989_v39 = vadd.f32 %v988_v38, %v2306_v33  ;;  %v917_v40 = vpop.f32.mrf.mxu0 }
 0x163   : > { %1021 = vst [vmem:[#allocation4 + $0xe0] sm:$0xff] %v916_v37  ;;  %v918_v41 = vadd.f32 %v917_v40, %v2308_v34  ;;  %v990_v42 = vpop.f32.mrf.mxu1 }
 0x164   : > { %1023 = vst [vmem:[#allocation4 + $0xf0] sm:$0xff] %v989_v39  ;;  %v991_v43 = vadd.f32 %v990_v42, %v2310_v36 }
 0x165   : > { %1022 = vst [vmem:[#allocation4 + $0xe8] sm:$0xff] %v918_v41 }
 0x166   : > { %1024 = vst [vmem:[#allocation4 + $0xf8] sm:$0xff] %v991_v43 }
 0x167 LB: >> { %v1620_v0 = vcombine.high %v2180_v29, %v2186_v31  ;;  %v1619_v33 = vcombine.low %v2180_v29, %v2186_v31  ;;  %v1616_v34 = vcombine.high %v2163_v25, %v2169_v27  ;;  %v1622_v36 = vcombine.high %v2183_v30, %v2189_v32  ;;  %s1587_s13 = sshll.u32 %s1935_s14, 1  ;;  %s1935_s14 = sphi %s2344_s14, %s1062_s14  }
 0x168   : >> { %v1621_v44 = vcombine.low %v2183_v30, %v2189_v32  ;;  %v1618_v45 = vcombine.high %v2166_v26, %v2177_v28  ;;  %v1615_v46 = vcombine.low %v2163_v25, %v2169_v27  ;;  %s1064_s15 = ssub.s32 7, %s1587_s13  ;;  %v1612_v47 = vcombine.high %v2151_v21, %v2157_v23 }
 0x169   : >> { %1239 = vmatprep.subr.bf16.mxu0 %v1620_v0  ;;  %1280 = vmatprep.subr.bf16.mxu1 %v1622_v36  ;;  %v1617_v48 = vcombine.low %v2166_v26, %v2177_v28  ;;  %s1065_s6 = smul.u32 %s1923_s21, %s1064_s15  ;;  %v1614_v49 = vcombine.high %v2154_v22, %v2160_v24  ;;  %v1942_v50 = vmov 0   ;;  %v1611_v51 = vcombine.low %v2151_v21, %v2157_v23 }
 0x16a   : >> { %1240 = vmatpush1.bf16.msra.mxu0 %v1619_v33  ;;  %1281 = vmatpush1.bf16.msra.mxu1 %v1621_v44  ;;  %v1608_v52 = vcombine.high %v2138_v17, %v2145_v19  ;;  %v1613_v53 = vcombine.low %v2154_v22, %v2160_v24  ;;  %v1610_v54 = vcombine.high %v2141_v18, %v2148_v20  ;;  %v1077_v33 = vld [vmem:[#allocation2] sm:$0xff] }
 0x16b   : >> { %1241 = vmatprep.subr.bf16.mxu0 %v1616_v34  ;;  %1282 = vmatprep.subr.bf16.mxu1 %v1618_v45  ;;  %s2372_s26 = sadd.s32 %s1935_s14, %s1065_s6  ;;  %v1607_v56 = vcombine.low %v2138_v17, %v2145_v19  ;;  %v1604_v57 = vcombine.high %v2126_v13, %v2132_v15  ;;  %v1609_v58 = vcombine.low %v2141_v18, %v2148_v20  ;;  %s1062_s14 = sadd.s32 1, %s1935_s14  }
 0x16c   : >> { %1271 = vmatprep.mubr.bf16.mxu0 %v1942_v50  ;;  %s1588_s27 = sshll.u32 %s2372_s26, 3  ;;  %1312 = vmatprep.mubr.bf16.mxu1 %v1942_v50  ;;  %v1606_v59 = vcombine.high %v2129_v14, %v2135_v16  ;;  %v1603_v60 = vcombine.low %v2126_v13, %v2132_v15  ;;  %v1600_v61 = vcombine.high %v2114_v9, %v2120_v11  ;;  %p1059_p7 = scmp.ge.s32.totalorder %s1062_s14, 8  }
 0x16d   : >> { %s1353_s9 = scalar_lea.vmem %s2450_s1, %s1588_s27  ;;  %1800 = vset.pattern.permute.xlu0 %v1942_v50  ;;  %v1605_v62 = vcombine.low %v2129_v14, %v2135_v16  ;;  %v1602_v63 = vcombine.high %v2117_v10, %v2123_v12  ;;  %v1599_v35 = vcombine.low %v2114_v9, %v2120_v11  ;;  %v1596_v37 = vcombine.high %v2102_v5, %v2108_v7  ;;  %s1068_s29 = sshra.s32 %s1588_s27, 3 }
 0x16e   : >> { %1242 = vmatpush1.bf16.msra.mxu0 %v1615_v46  ;;  %1283 = vmatpush1.bf16.msra.mxu1 %v1617_v48  ;;  %v1354_v55 = vld [vmem:[%s1353_s9] sm:$0xff]  ;;  %v1601_v38 = vcombine.low %v2117_v10, %v2123_v12  ;;  %v1598_v39 = vcombine.high %v2105_v6, %v2111_v8  ;;  %v1595_v40 = vcombine.low %v2102_v5, %v2108_v7  ;;  %s1631_s7 = sshll.u32 %s1068_s29, 5 }
 0x16f   : >> { %1243 = vmatprep.subr.bf16.mxu0 %v1612_v47  ;;  %1284 = vmatprep.subr.bf16.mxu1 %v1614_v49  ;;  %v1592_v41 = vcombine.high %v2090_v1, %v2096_v3  ;;  %v1597_v42 = vcombine.low %v2105_v6, %v2111_v8  ;;  %v1594_v43 = vcombine.high %v2093_v2, %v2099_v4  ;;  %s1072_s10 = scalar_lea.vmem [#allocation4], %s1631_s7 }
 0x170   : >> { %1357 = vperm.xlu0 %1800, %v1354_v55   ;;  %v1591_v0 = vcombine.low %v2090_v1, %v2096_v3  ;;  %v1593_v34 = vcombine.low %v2093_v2, %v2099_v4  ;;  %v1078_v36 = vpack.c.bf16 %v1077_v33, %v1077_v33  ;;  %v1073_v44 = vld [vmem:[%s1072_s10] sm:$0xff]  ;;  %v1074_v46 = vld [vmem:[%s1072_s10 + $0x8] sm:$0xff] }
 0x172   : >> { %1244 = vmatpush1.bf16.msra.mxu0 %v1611_v51  ;;  %1285 = vmatpush1.bf16.msra.mxu1 %v1613_v53 }
 0x173   : >> { %1245 = vmatprep.subr.bf16.mxu0 %v1608_v52  ;;  %1286 = vmatprep.subr.bf16.mxu1 %v1610_v54 }
 0x176   : >> { %1246 = vmatpush1.bf16.msra.mxu0 %v1607_v56  ;;  %1287 = vmatpush1.bf16.msra.mxu1 %v1609_v58  ;;  %v1076_v58 = vld [vmem:[%s1072_s10 + $0x18] sm:$0xff] }
 0x177   : >> { %1247 = vmatprep.subr.bf16.mxu0 %v1604_v57  ;;  %1288 = vmatprep.subr.bf16.mxu1 %v1606_v59  ;;  %v1075_v59 = vld [vmem:[%s1072_s10 + $0x10] sm:$0xff] }
 0x17a   : >> { %1248 = vmatpush1.bf16.msra.mxu0 %v1603_v60  ;;  %1289 = vmatpush1.bf16.msra.mxu1 %v1605_v62 }
 0x17b   : >> { %1249 = vmatprep.subr.bf16.mxu0 %v1600_v61  ;;  %1290 = vmatprep.subr.bf16.mxu1 %v1602_v63 }
 0x17e   : >> { %1250 = vmatpush1.bf16.msra.mxu0 %v1599_v35  ;;  %1291 = vmatpush1.bf16.msra.mxu1 %v1601_v38 }
 0x17f   : >> { %1251 = vmatprep.subr.bf16.mxu0 %v1596_v37  ;;  %1292 = vmatprep.subr.bf16.mxu1 %v1598_v39 }
 0x182   : >> { %1252 = vmatpush1.bf16.msra.mxu0 %v1595_v40  ;;  %1293 = vmatpush1.bf16.msra.mxu1 %v1597_v42  ;;  %v1344_v42 = vld [vmem:[#allocation3] sm:$0xff] }
 0x183   : >> { %1253 = vmatprep.subr.bf16.mxu0 %v1592_v41  ;;  %1294 = vmatprep.subr.bf16.mxu1 %v1594_v43 }
 0x186   : >> { %1254 = vmatpush1.bf16.msra.mxu0 %v1591_v0  ;;  %1295 = vmatpush1.bf16.msra.mxu1 %v1593_v34 }
 0x189   : >> { %1272 = vmatmul.mubr.bf16.vlgmr.msra.gmra.mxu0 %v1078_v36  ;;  %1313 = vmatmul.mubr.bf16.vlgmr.msra.gmra.mxu1 %v1078_v36 }
 0x249   : >> { %v1273_v45 = vpop.f32.mrf.mxu0  ;;  %v1314_v48 = vpop.f32.mrf.mxu1 }
 0x24a   : >> { %v1321_v47 = vadd.f32 %v1273_v45, %v1073_v44  ;;  %v1323_v61 = vadd.f32 %v1314_v48, %v1075_v59  ;;  %v1352_v48 = vld [vmem:[%s2086_s16] sm:$0xff] }
 0x24b   : >> { %v1275_v49 = vpop.f32.mrf.mxu0  ;;  %v1316_v52 = vpop.f32.mrf.mxu1 }
 0x24c   : >> { %v1623_v50 = vmul.f32 -1.442695, %v1321_v47  ;;  %v1322_v51 = vadd.f32 %v1275_v49, %v1074_v46  ;;  %v1324_v60 = vadd.f32 %v1316_v52, %v1076_v58  ;;  %v1358_v46 = vpop.permute.xlu0 %1357 }
 0x24d   : >> { %v1277_v53 = vpop.f32.mrf.mxu0  ;;  %v1318_v55 = vpop.f32.mrf.mxu1 }
 0x24e   : >> { %1801 = vpow2.f32 %v1623_v50  ;;  %v1624_v54 = vmul.f32 -1.442695, %v1322_v51  ;;  %v1625_v62 = vmul.f32 -1.442695, %v1324_v60 }
 0x24f   : >> { %v1278_v56 = vpop.f32.mrf.mxu0  ;;  %v1319_v57 = vpop.f32.mrf.mxu1 }
 0x250   : >> { %1803 = vpow2.f32 %v1624_v54 }
 0x251   : >> { %1805 = vtanh.f32 %v1323_v61 }
 0x252   : >> { %1807 = vpow2.f32 %v1625_v62 }
 0x25b   : >> { %v1802_v63 = vpop.eup %1801 }
 0x25c   : >> { %v1328_v35 = vadd.f32 1.0, %v1802_v63 }
 0x25d   : >> { %v1804_v37 = vpop.eup %1803 }
 0x25e   : >> { %1809 = vrcp.f32 %v1328_v35  ;;  %v1334_v38 = vadd.f32 1.0, %v1804_v37  ;;  %v1806_v39 = vpop.eup %1805 }
 0x25f   : >> { %v1808_v40 = vpop.eup %1807 }
 0x260   : >> { %1811 = vrcp.f32 %v1334_v38  ;;  %v1341_v0 = vadd.f32 1.0, %v1808_v40 }
 0x262   : >> { %1813 = vrcp.f32 %v1341_v0 }
 0x26b   : >> { %v1810_v41 = vpop.eup %1809 }
 0x26c   : >> { %v1346_v34 = vmul.f32 %v1810_v41, %v1806_v39 }
 0x26d   : >> { %v1812_v43 = vpop.eup %1811 }
 0x26e   : >> { %v1345_v33 = vmul.f32 %v1812_v43, %v1344_v42 }
 0x26f   : >> { %v1814_v44 = vpop.eup %1813 }
 0x270   : >> { %v1347_v36 = vadd.f32 %v1346_v34, %v1345_v33 }
 0x272   : >> { %1350 = vst [vmem:[#allocation3] sm:$0xff] %v1347_v36  ;;  %1815 = vtanh.f32 %v1347_v36 }
 0x27f   : >> { %v1816_v45 = vpop.eup %1815 }
 0x280   : >> { %v1349_v47 = vmul.f32 %v1816_v45, %v1814_v44 }
 0x282   : >> { %1351 = vst [vmem:[#allocation2] sm:$0xff] %v1349_v47  ;;  %v1360_v49 = vmul.f32 %v1358_v46, %v1349_v47 }
 0x284   : >> { %v1361_v50 = vadd.f32 %v1360_v49, %v1352_v48  ;;  %1061 = sbr.rel (!%p1059_p7) target bundleno = 359 (0x167), region = 115 }
 0x286   : >> { %1362 = vst [vmem:[%s2086_s16] sm:$0xff] %v1361_v50 }
 0x289 PF: > { %s21_s23 = sadd.s32 1, %s1931_s23   ;;  %s2459_s18 = smov %s1915_s19 }
 0x28a   : > { %p18_p10 = scmp.ge.s32.totalorder %s21_s23, 4   ;;  %s2460_s19 = smov %s1919_s20 }
 0x28b   : > { %s2461_s20 = smov %s2022_s30  ;;  %s2462_s21 = smov %s1927_s22 }
 0x28c   : > { %s2463_s22 = smov %s2465_s25  ;;  %20 = sbr.rel (!%p18_p10) target bundleno = 6 (0x6), region = 126 }
 0x291   :  { %1382 = vsyncpa [#allocation6], 1 }
 0x292   :  { %1384 = vsyncpa [#allocation6 + $0x1], 1 }
 0x293   :  { %1385 = vsyncpa [#allocation8], 1 }
 0x294   :  { %1387 = vsyncpa [#allocation8 + $0x1], 1 }

</bundles_post_ra>
